<compile_context>
chip_gen: v5e
topology: v5e:2x2
jax: 0.10.0
libtpu: 0.0.40
codegen_flags: <defaults>
</compile_context>

<pallas_src>
import functools

import numpy as np
import jax
import jax.numpy as jnp
from jax import lax
from jax.experimental import pallas as pl
from jax.experimental.pallas import tpu as pltpu


# ----------------------------- host-side helpers --------------------------- #

def _bilinear_matrix(n_in: int, scale: int = 2) -> np.ndarray:
    """1-D interpolation matrix matching torch.nn.Upsample(scale_factor=2,
    mode='bilinear', align_corners=False) along one spatial axis."""
    n_out = n_in * scale
    o = np.arange(n_out)
    src = (o + 0.5) / scale - 0.5
    src = np.clip(src, 0.0, None)                      # torch clamps negative coords
    i0 = np.minimum(np.floor(src).astype(np.int64), n_in - 1)
    frac = (src - i0).astype(np.float32)
    i1 = np.minimum(i0 + 1, n_in - 1)
    U = np.zeros((n_out, n_in), np.float32)
    U[o, i0] += (1.0 - frac)
    U[o, i1] += frac
    return U


def _shift_matrix(n: int, offset: int) -> np.ndarray:
    """S[w, x] = 1 iff w == x + offset (zero outside [0, n))."""
    S = np.zeros((n, n), np.float32)
    x = np.arange(n)
    w = x + offset
    ok = (w >= 0) & (w < n)
    S[w[ok], x[ok]] = 1.0
    return S


def _banded_conv_matrices(w_hwio, n_cols: int):
    """Fold the 3 dx taps + W zero-padding of a 3x3 'SAME' conv into one
    banded matrix per dy: M[dy][w*Cin + i, x*Cout + o] = w_hwio[dy, x-w+1, i, o].

    Kernel then computes out = sum_dy pad[dy:dy+H, :] @ M[dy].
    TODO(synk): at large W, build these via scatter / bake once per model
    (size grows as W^2 * Cin * Cout) or tile along W.
    """
    kh, kw, _, _ = w_hwio.shape
    mats = []
    for dy in range(kh):
        m = None
        for dx in range(kw):
            term = jnp.kron(jnp.asarray(_shift_matrix(n_cols, dx - 1)),
                            w_hwio[dy, dx].astype(jnp.float32))
            m = term if m is None else m + term
        mats.append(m)
    return jnp.stack(mats)                 # (3, n_cols*Cin, n_cols*Cout)


# ------------------------------- fused kernel ------------------------------ #

def _upsampling_block_kernel(x_ref, uh_ref, kw_ref, m1_ref, b1_ref,
                             m2_ref, b2_ref, alpha_ref, o_ref,
                             pad1_ref, pad2_ref, *, H, W, Cin, Cout):
    H2, W2 = 2 * H, 2 * W
    a1 = alpha_ref[0]                       # PReLU slopes (SMEM scalars)
    a2 = alpha_ref[1]

    # Zero only the 1-row H borders of the pad scratch (interior is fully
    # overwritten every step). Written each step so correctness does not
    # depend on which TensorCore ran program_id == 0.
    pad1_ref[0:1, :] = jnp.zeros((1, W2 * Cin), jnp.float32)
    pad1_ref[H2 + 1:H2 + 2, :] = jnp.zeros((1, W2 * Cin), jnp.float32)
    pad2_ref[0:1, :] = jnp.zeros((1, W2 * Cout), jnp.float32)
    pad2_ref[H2 + 1:H2 + 2, :] = jnp.zeros((1, W2 * Cout), jnp.float32)

    # ---- bilinear 2x upsample (align_corners=False), lane-dense ----
    x = x_ref[0, :, :]                                            # (H, W*Cin) bf16
    yh = jnp.dot(uh_ref[...], x,
                 preferred_element_type=jnp.float32)              # (2H, W*Cin)
    up = jnp.dot(yh.astype(jnp.bfloat16), kw_ref[...],
                 preferred_element_type=jnp.float32)              # (2H, 2W*Cin)
    up = jnp.where(up > 0, up, a1 * up)                           # PReLU #1

    # ---- Conv2d(Cin, Cout, 3, pad=1): 3 banded MXU matmuls (one per dy) ----
    pad1_ref[1:H2 + 1, :] = up
    acc = jnp.zeros((H2, W2 * Cout), jnp.float32)
    for dy in range(3):
        acc = acc + jnp.dot(pad1_ref[dy:dy + H2, :].astype(jnp.bfloat16),
                            m1_ref[dy], preferred_element_type=jnp.float32)
    h = acc + b1_ref[...]
    h = jnp.where(h > 0, h, a2 * h)                               # PReLU #2

    # ---- Conv2d(Cout, Cout, 3, pad=1) ----
    pad2_ref[1:H2 + 1, :] = h
    acc2 = jnp.zeros((H2, W2 * Cout), jnp.float32)
    for dy in range(3):
        acc2 = acc2 + jnp.dot(pad2_ref[dy:dy + H2, :].astype(jnp.bfloat16),
                              m2_ref[dy], preferred_element_type=jnp.float32)

    # Lane-dense unmasked store: last dim W2*Cout is a multiple of 128 here.
    o_ref[0, :, :] = acc2 + b2_ref[...]


# ------------------------------- JAX wrapper -------------------------------- #

def upsampling_block(x_nchw, params):
    """Forward pass of UpSamplingBlock. Input/output NCHW like PyTorch."""
    N, Cin, H, W = x_nchw.shape
    Cout = params['w1'].shape[-1]
    H2, W2 = 2 * H, 2 * W

    # lane-dense (H, W*Cin) slab per batch element (channels minor), bf16 I/O
    x_flat = jnp.transpose(x_nchw, (0, 2, 3, 1)).reshape(N, H, W * Cin)
    x_flat = x_flat.astype(jnp.bfloat16)

    uh_np = _bilinear_matrix(H)                                   # (2H, H), exact in bf16
    uw_np = _bilinear_matrix(W)                                   # (2W, W)
    uh = jnp.asarray(uh_np, jnp.bfloat16)
    # W-upsample as a single matmul on the lane-dense slab:
    # up = yh @ kron(uw^T, I_Cin), shape (W*Cin, 2W*Cin).
    kw_up = jnp.asarray(np.kron(uw_np.T, np.eye(Cin, dtype=np.float32)),
                        jnp.bfloat16)

    m1 = _banded_conv_matrices(params['w1'], W2).astype(jnp.bfloat16)
    m2 = _banded_conv_matrices(params['w2'], W2).astype(jnp.bfloat16)
    b1_row = jnp.tile(params['b1'].astype(jnp.float32), W2).reshape(1, W2 * Cout)
    b2_row = jnp.tile(params['b2'].astype(jnp.float32), W2).reshape(1, W2 * Cout)
    # NOTE: assumes scalar PReLU (num_parameters=1), like the PyTorch module.
    alphas = jnp.stack([params['a1'], params['a2']]).astype(jnp.float32)

    kernel = functools.partial(_upsampling_block_kernel,
                               H=H, W=W, Cin=Cin, Cout=Cout)

    # TODO(synk): for large resolutions (and v7x's 64 MiB VMEM / 2 TCs) add an
    # H-tile "parallel" grid axis with a 2-row input halo (1 for the upsample,
    # 1 per conv) so blocks stay small; unnecessary at these sizes.
    out_flat = pl.pallas_call(
        kernel,
        out_shape=jax.ShapeDtypeStruct((N, H2, W2 * Cout), jnp.float32),
        grid=(N,),
        in_specs=[
            pl.BlockSpec((1, H, W * Cin), lambda n: (n, 0, 0)),
            pl.BlockSpec((H2, H), lambda n: (0, 0)),
            pl.BlockSpec((W * Cin, W2 * Cin), lambda n: (0, 0)),
            pl.BlockSpec((3, W2 * Cin, W2 * Cout), lambda n: (0, 0, 0)),
            pl.BlockSpec((1, W2 * Cout), lambda n: (0, 0)),
            pl.BlockSpec((3, W2 * Cout, W2 * Cout), lambda n: (0, 0, 0)),
            pl.BlockSpec((1, W2 * Cout), lambda n: (0, 0)),
            pl.BlockSpec(memory_space=pltpu.MemorySpace.SMEM),    # PReLU slopes
        ],
        out_specs=pl.BlockSpec((1, H2, W2 * Cout), lambda n: (n, 0, 0)),
        scratch_shapes=[
            pltpu.VMEM((H2 + 2, W2 * Cin), jnp.float32),          # conv1 H-pad buf
            pltpu.VMEM((H2 + 2, W2 * Cout), jnp.float32),         # conv2 H-pad buf
        ],
        compiler_params=pltpu.CompilerParams(
            dimension_semantics=("parallel",),
            vmem_limit_bytes=64 * 1024 * 1024),
    )(x_flat, uh, kw_up, m1, b1_row, m2, b2_row, alphas)

    out = out_flat.reshape(N, H2, W2, Cout)
    return jnp.transpose(out, (0, 3, 1, 2))                       # NHWC -> NCHW


# ---------------------------- pure-JAX reference ---------------------------- #

def ref_forward(x_nchw, params):
    hi = jax.lax.Precision.HIGHEST
    x = jnp.transpose(x_nchw, (0, 2, 3, 1))
    N, H, W, C = x.shape
    uh = jnp.asarray(_bilinear_matrix(H))
    uw = jnp.asarray(_bilinear_matrix(W))
    up = jnp.einsum('yh,xw,nhwc->nyxc', uh, uw, x, precision=hi)
    up = jnp.where(up > 0, up, params['a1'] * up)
    h = lax.conv_general_dilated(
        up, params['w1'], (1, 1), 'SAME',
        dimension_numbers=('NHWC', 'HWIO', 'NHWC'), precision=hi) + params['b1']
    h = jnp.where(h > 0, h, params['a2'] * h)
    out = lax.conv_general_dilated(
        h, params['w2'], (1, 1), 'SAME',
        dimension_numbers=('NHWC', 'HWIO', 'NHWC'), precision=hi) + params['b2']
    return jnp.transpose(out, (0, 3, 1, 2))


if __name__ == "__main__":
    N, C_IN, H, W = 2, 4, 16, 16
    C_OUT = 8

    key = jax.random.PRNGKey(0)
    k_x, k_w1, k_b1, k_w2, k_b2 = jax.random.split(key, 5)
    x = jax.random.normal(k_x, (N, C_IN, H, W), jnp.float32)

    # Deterministic synthetic parameters (shapes per nn.Module __init__).
    # Conv weights stored HWIO (torch uses OIHW — synthetic, so layout is ours).
    params = {
        'a1': jnp.float32(0.25),                                  # PReLU #1 init
        'a2': jnp.float32(0.25),                                  # PReLU #2 init
        'w1': jax.random.normal(k_w1, (3, 3, C_IN, C_OUT), jnp.float32) * 0.1,
        'b1': jax.random.normal(k_b1, (C_OUT,), jnp.float32) * 0.1,
        'w2': jax.random.normal(k_w2, (3, 3, C_OUT, C_OUT), jnp.float32) * 0.1,
        'b2': jax.random.normal(k_b2, (C_OUT,), jnp.float32) * 0.1,
    }

    out = upsampling_block(x, params)
    out = jax.block_until_ready(out)

    assert out.shape == (N, C_OUT, 2 * H, 2 * W), out.shape

    ref = jax.block_until_ready(ref_forward(x, params))
    # Tolerance covers bf16 MXU operands (activations + weights, f32 accum)
    # in the kernel vs the f32 HIGHEST-precision reference.
    np.testing.assert_allclose(np.asarray(out), np.asarray(ref),
                               rtol=3e-2, atol=3e-2)

    print("KERNEL_OK")
</pallas_src>

<mosaic_0001>
module attributes {stable_mosaic.version = 11 : i64} {
  func.func @_upsampling_block_kernel(%arg0: i32, %arg1: memref<1x16x64xbf16, #tpu.memory_space<vmem>>, %arg2: memref<32x16xbf16, #tpu.memory_space<vmem>>, %arg3: memref<64x128xbf16, #tpu.memory_space<vmem>>, %arg4: memref<3x128x256xbf16, #tpu.memory_space<vmem>>, %arg5: memref<1x256xf32, #tpu.memory_space<vmem>>, %arg6: memref<3x256x256xbf16, #tpu.memory_space<vmem>>, %arg7: memref<1x256xf32, #tpu.memory_space<vmem>>, %arg8: memref<2xf32, #tpu.memory_space<smem>>, %arg9: memref<1x32x256xf32, #tpu.memory_space<vmem>>, %arg10: memref<34x128xf32, #tpu.memory_space<vmem>>, %arg11: memref<34x256xf32, #tpu.memory_space<vmem>>) attributes {dimension_semantics = [#tpu.dimension_semantics<parallel>], iteration_bounds = array<i64: 2>, scalar_prefetch = 0 : i64, scratch_operands = 2 : i64, tpu.core_type = #tpu.core_type<tc>, window_params = [{transform_indices = @transform_0, window_bounds = array<i64: 1, 16, 64>}, {pipeline_mode = #tpu.pipeline_mode<synchronous>, transform_indices = @transform_1, window_bounds = array<i64: 32, 16>}, {pipeline_mode = #tpu.pipeline_mode<synchronous>, transform_indices = @transform_2, window_bounds = array<i64: 64, 128>}, {pipeline_mode = #tpu.pipeline_mode<synchronous>, transform_indices = @transform_3, window_bounds = array<i64: 3, 128, 256>}, {pipeline_mode = #tpu.pipeline_mode<synchronous>, transform_indices = @transform_4, window_bounds = array<i64: 1, 256>}, {pipeline_mode = #tpu.pipeline_mode<synchronous>, transform_indices = @transform_5, window_bounds = array<i64: 3, 256, 256>}, {pipeline_mode = #tpu.pipeline_mode<synchronous>, transform_indices = @transform_6, window_bounds = array<i64: 1, 256>}, {transform_indices = @transform_7, window_bounds = array<i64: 2>}, {transform_indices = @transform_8, window_bounds = array<i64: 1, 32, 256>}]} {
    %c0 = arith.constant 0 : index
    %0 = memref.load %arg8[%c0] : memref<2xf32, #tpu.memory_space<smem>>
    %c1 = arith.constant 1 : index
    %1 = memref.load %arg8[%c1] : memref<2xf32, #tpu.memory_space<smem>>
    %cst = arith.constant 0.000000e+00 : f32
    %2 = vector.broadcast %cst : f32 to vector<1x128xf32>
    %c0_0 = arith.constant 0 : index
    %c0_1 = arith.constant 0 : index
    %3 = vector.load %arg10[%c0_0, %c0_1] : memref<34x128xf32, #tpu.memory_space<vmem>>, vector<1x128xf32>
    tpu.vector_store %arg10[%c0_0, %c0_1], %2 {strides = array<i32>} : memref<34x128xf32, #tpu.memory_space<vmem>>, vector<1x128xf32>,
    %cst_2 = arith.constant 0.000000e+00 : f32
    %4 = vector.broadcast %cst_2 : f32 to vector<1x128xf32>
    %c33 = arith.constant 33 : index
    %c0_3 = arith.constant 0 : index
    %5 = vector.load %arg10[%c33, %c0_3] : memref<34x128xf32, #tpu.memory_space<vmem>>, vector<1x128xf32>
    tpu.vector_store %arg10[%c33, %c0_3], %4 {strides = array<i32>} : memref<34x128xf32, #tpu.memory_space<vmem>>, vector<1x128xf32>,
    %cst_4 = arith.constant 0.000000e+00 : f32
    %6 = vector.broadcast %cst_4 : f32 to vector<1x256xf32>
    %c0_5 = arith.constant 0 : index
    %c0_6 = arith.constant 0 : index
    %7 = vector.load %arg11[%c0_5, %c0_6] : memref<34x256xf32, #tpu.memory_space<vmem>>, vector<1x256xf32>
    tpu.vector_store %arg11[%c0_5, %c0_6], %6 {strides = array<i32>} : memref<34x256xf32, #tpu.memory_space<vmem>>, vector<1x256xf32>,
    %cst_7 = arith.constant 0.000000e+00 : f32
    %8 = vector.broadcast %cst_7 : f32 to vector<1x256xf32>
    %c33_8 = arith.constant 33 : index
    %c0_9 = arith.constant 0 : index
    %9 = vector.load %arg11[%c33_8, %c0_9] : memref<34x256xf32, #tpu.memory_space<vmem>>, vector<1x256xf32>
    tpu.vector_store %arg11[%c33_8, %c0_9], %8 {strides = array<i32>} : memref<34x256xf32, #tpu.memory_space<vmem>>, vector<1x256xf32>,
    %c0_10 = arith.constant 0 : index
    %c0_11 = arith.constant 0 : index
    %c0_12 = arith.constant 0 : index
    %10 = vector.load %arg1[%c0_10, %c0_11, %c0_12] : memref<1x16x64xbf16, #tpu.memory_space<vmem>>, vector<1x16x64xbf16>
    %11 = vector.shape_cast %10 : vector<1x16x64xbf16> to vector<16x64xbf16>
    %c0_13 = arith.constant 0 : index
    %c0_14 = arith.constant 0 : index
    %12 = vector.load %arg2[%c0_13, %c0_14] : memref<32x16xbf16, #tpu.memory_space<vmem>>, vector<32x16xbf16>
    %cst_15 = arith.constant dense<0.000000e+00> : vector<32x64xf32>
    %13 = tpu.matmul %12, %11, %cst_15 {dimension_numbers = #tpu.dot_dimension_numbers<[1], [0], [0], [1], [0, 0, 1, 1], [], []>} : vector<32x16xbf16>, vector<16x64xbf16>, vector<32x64xf32> -> vector<32x64xf32>
    %14 = arith.truncf %13 : vector<32x64xf32> to vector<32x64xbf16>
    %c0_16 = arith.constant 0 : index
    %c0_17 = arith.constant 0 : index
    %15 = vector.load %arg3[%c0_16, %c0_17] : memref<64x128xbf16, #tpu.memory_space<vmem>>, vector<64x128xbf16>
    %cst_18 = arith.constant dense<0.000000e+00> : vector<32x128xf32>
    %16 = tpu.matmul %14, %15, %cst_18 {dimension_numbers = #tpu.dot_dimension_numbers<[1], [0], [0], [1], [0, 0, 1, 1], [], []>} : vector<32x64xbf16>, vector<64x128xbf16>, vector<32x128xf32> -> vector<32x128xf32>
    %cst_19 = arith.constant 0.000000e+00 : f32
    %17 = vector.broadcast %cst_19 : f32 to vector<32x128xf32>
    %18 = arith.cmpf ogt, %16, %17 : vector<32x128xf32>
    %19 = vector.broadcast %0 : f32 to vector<32x128xf32>
    %20 = arith.mulf %19, %16 : vector<32x128xf32>
    %21 = arith.select %18, %16, %20 : vector<32x128xi1>, vector<32x128xf32>
    %c1_20 = arith.constant 1 : index
    %c0_21 = arith.constant 0 : index
    %22 = vector.load %arg10[%c1_20, %c0_21] : memref<34x128xf32, #tpu.memory_space<vmem>>, vector<32x128xf32>
    tpu.vector_store %arg10[%c1_20, %c0_21], %21 {strides = array<i32>} : memref<34x128xf32, #tpu.memory_space<vmem>>, vector<32x128xf32>,
    %cst_22 = arith.constant 0.000000e+00 : f32
    %23 = vector.broadcast %cst_22 : f32 to vector<32x256xf32>
    %c0_23 = arith.constant 0 : index
    %c0_24 = arith.constant 0 : index
    %24 = vector.load %arg10[%c0_23, %c0_24] : memref<34x128xf32, #tpu.memory_space<vmem>>, vector<32x128xf32>
    %25 = arith.truncf %24 : vector<32x128xf32> to vector<32x128xbf16>
    %c0_25 = arith.constant 0 : index
    %c0_26 = arith.constant 0 : index
    %c0_27 = arith.constant 0 : index
    %26 = vector.load %arg4[%c0_25, %c0_26, %c0_27] : memref<3x128x256xbf16, #tpu.memory_space<vmem>>, vector<1x128x256xbf16>
    %27 = vector.shape_cast %26 : vector<1x128x256xbf16> to vector<128x256xbf16>
    %cst_28 = arith.constant dense<0.000000e+00> : vector<32x256xf32>
    %28 = tpu.matmul %25, %27, %cst_28 {dimension_numbers = #tpu.dot_dimension_numbers<[1], [0], [0], [1], [0, 0, 1, 1], [], []>} : vector<32x128xbf16>, vector<128x256xbf16>, vector<32x256xf32> -> vector<32x256xf32>
    %29 = arith.addf %23, %28 : vector<32x256xf32>
    %c1_29 = arith.constant 1 : index
    %c0_30 = arith.constant 0 : index
    %30 = vector.load %arg10[%c1_29, %c0_30] : memref<34x128xf32, #tpu.memory_space<vmem>>, vector<32x128xf32>
    %31 = arith.truncf %30 : vector<32x128xf32> to vector<32x128xbf16>
    %c1_31 = arith.constant 1 : index
    %c0_32 = arith.constant 0 : index
    %c0_33 = arith.constant 0 : index
    %32 = vector.load %arg4[%c1_31, %c0_32, %c0_33] : memref<3x128x256xbf16, #tpu.memory_space<vmem>>, vector<1x128x256xbf16>
    %33 = vector.shape_cast %32 : vector<1x128x256xbf16> to vector<128x256xbf16>
    %cst_34 = arith.constant dense<0.000000e+00> : vector<32x256xf32>
    %34 = tpu.matmul %31, %33, %cst_34 {dimension_numbers = #tpu.dot_dimension_numbers<[1], [0], [0], [1], [0, 0, 1, 1], [], []>} : vector<32x128xbf16>, vector<128x256xbf16>, vector<32x256xf32> -> vector<32x256xf32>
    %35 = arith.addf %29, %34 : vector<32x256xf32>
    %c2 = arith.constant 2 : index
    %c0_35 = arith.constant 0 : index
    %36 = vector.load %arg10[%c2, %c0_35] : memref<34x128xf32, #tpu.memory_space<vmem>>, vector<32x128xf32>
    %37 = arith.truncf %36 : vector<32x128xf32> to vector<32x128xbf16>
    %c2_36 = arith.constant 2 : index
    %c0_37 = arith.constant 0 : index
    %c0_38 = arith.constant 0 : index
    %38 = vector.load %arg4[%c2_36, %c0_37, %c0_38] : memref<3x128x256xbf16, #tpu.memory_space<vmem>>, vector<1x128x256xbf16>
    %39 = vector.shape_cast %38 : vector<1x128x256xbf16> to vector<128x256xbf16>
    %cst_39 = arith.constant dense<0.000000e+00> : vector<32x256xf32>
    %40 = tpu.matmul %37, %39, %cst_39 {dimension_numbers = #tpu.dot_dimension_numbers<[1], [0], [0], [1], [0, 0, 1, 1], [], []>} : vector<32x128xbf16>, vector<128x256xbf16>, vector<32x256xf32> -> vector<32x256xf32>
    %41 = arith.addf %35, %40 : vector<32x256xf32>
    %c0_40 = arith.constant 0 : index
    %c0_41 = arith.constant 0 : index
    %42 = vector.load %arg5[%c0_40, %c0_41] : memref<1x256xf32, #tpu.memory_space<vmem>>, vector<1x256xf32>
    %43 = vector.broadcast %42 : vector<1x256xf32> to vector<32x256xf32>
    %44 = arith.addf %41, %43 : vector<32x256xf32>
    %cst_42 = arith.constant 0.000000e+00 : f32
    %45 = vector.broadcast %cst_42 : f32 to vector<32x256xf32>
    %46 = arith.cmpf ogt, %44, %45 : vector<32x256xf32>
    %47 = vector.broadcast %1 : f32 to vector<32x256xf32>
    %48 = arith.mulf %47, %44 : vector<32x256xf32>
    %49 = arith.select %46, %44, %48 : vector<32x256xi1>, vector<32x256xf32>
    %c1_43 = arith.constant 1 : index
    %c0_44 = arith.constant 0 : index
    %50 = vector.load %arg11[%c1_43, %c0_44] : memref<34x256xf32, #tpu.memory_space<vmem>>, vector<32x256xf32>
    tpu.vector_store %arg11[%c1_43, %c0_44], %49 {strides = array<i32>} : memref<34x256xf32, #tpu.memory_space<vmem>>, vector<32x256xf32>,
    %cst_45 = arith.constant 0.000000e+00 : f32
    %51 = vector.broadcast %cst_45 : f32 to vector<32x256xf32>
    %c0_46 = arith.constant 0 : index
    %c0_47 = arith.constant 0 : index
    %52 = vector.load %arg11[%c0_46, %c0_47] : memref<34x256xf32, #tpu.memory_space<vmem>>, vector<32x256xf32>
    %53 = arith.truncf %52 : vector<32x256xf32> to vector<32x256xbf16>
    %c0_48 = arith.constant 0 : index
    %c0_49 = arith.constant 0 : index
    %c0_50 = arith.constant 0 : index
    %54 = vector.load %arg6[%c0_48, %c0_49, %c0_50] : memref<3x256x256xbf16, #tpu.memory_space<vmem>>, vector<1x256x256xbf16>
    %55 = vector.shape_cast %54 : vector<1x256x256xbf16> to vector<256x256xbf16>
    %cst_51 = arith.constant dense<0.000000e+00> : vector<32x256xf32>
    %56 = tpu.matmul %53, %55, %cst_51 {dimension_numbers = #tpu.dot_dimension_numbers<[1], [0], [0], [1], [0, 0, 1, 1], [], []>} : vector<32x256xbf16>, vector<256x256xbf16>, vector<32x256xf32> -> vector<32x256xf32>
    %57 = arith.addf %51, %56 : vector<32x256xf32>
    %c1_52 = arith.constant 1 : index
    %c0_53 = arith.constant 0 : index
    %58 = vector.load %arg11[%c1_52, %c0_53] : memref<34x256xf32, #tpu.memory_space<vmem>>, vector<32x256xf32>
    %59 = arith.truncf %58 : vector<32x256xf32> to vector<32x256xbf16>
    %c1_54 = arith.constant 1 : index
    %c0_55 = arith.constant 0 : index
    %c0_56 = arith.constant 0 : index
    %60 = vector.load %arg6[%c1_54, %c0_55, %c0_56] : memref<3x256x256xbf16, #tpu.memory_space<vmem>>, vector<1x256x256xbf16>
    %61 = vector.shape_cast %60 : vector<1x256x256xbf16> to vector<256x256xbf16>
    %cst_57 = arith.constant dense<0.000000e+00> : vector<32x256xf32>
    %62 = tpu.matmul %59, %61, %cst_57 {dimension_numbers = #tpu.dot_dimension_numbers<[1], [0], [0], [1], [0, 0, 1, 1], [], []>} : vector<32x256xbf16>, vector<256x256xbf16>, vector<32x256xf32> -> vector<32x256xf32>
    %63 = arith.addf %57, %62 : vector<32x256xf32>
    %c2_58 = arith.constant 2 : index
    %c0_59 = arith.constant 0 : index
    %64 = vector.load %arg11[%c2_58, %c0_59] : memref<34x256xf32, #tpu.memory_space<vmem>>, vector<32x256xf32>
    %65 = arith.truncf %64 : vector<32x256xf32> to vector<32x256xbf16>
    %c2_60 = arith.constant 2 : index
    %c0_61 = arith.constant 0 : index
    %c0_62 = arith.constant 0 : index
    %66 = vector.load %arg6[%c2_60, %c0_61, %c0_62] : memref<3x256x256xbf16, #tpu.memory_space<vmem>>, vector<1x256x256xbf16>
    %67 = vector.shape_cast %66 : vector<1x256x256xbf16> to vector<256x256xbf16>
    %cst_63 = arith.constant dense<0.000000e+00> : vector<32x256xf32>
    %68 = tpu.matmul %65, %67, %cst_63 {dimension_numbers = #tpu.dot_dimension_numbers<[1], [0], [0], [1], [0, 0, 1, 1], [], []>} : vector<32x256xbf16>, vector<256x256xbf16>, vector<32x256xf32> -> vector<32x256xf32>
    %69 = arith.addf %63, %68 : vector<32x256xf32>
    %c0_64 = arith.constant 0 : index
    %c0_65 = arith.constant 0 : index
    %70 = vector.load %arg7[%c0_64, %c0_65] : memref<1x256xf32, #tpu.memory_space<vmem>>, vector<1x256xf32>
    %71 = vector.broadcast %70 : vector<1x256xf32> to vector<32x256xf32>
    %72 = arith.addf %69, %71 : vector<32x256xf32>
    %c0_66 = arith.constant 0 : index
    %c0_67 = arith.constant 0 : index
    %c0_68 = arith.constant 0 : index
    %73 = vector.load %arg9[%c0_66, %c0_67, %c0_68] : memref<1x32x256xf32, #tpu.memory_space<vmem>>, vector<1x32x256xf32>
    %74 = vector.shape_cast %73 : vector<1x32x256xf32> to vector<32x256xf32>
    %75 = vector.shape_cast %72 : vector<32x256xf32> to vector<1x32x256xf32>
    tpu.vector_store %arg9[%c0_66, %c0_67, %c0_68], %75 {strides = array<i32>} : memref<1x32x256xf32, #tpu.memory_space<vmem>>, vector<1x32x256xf32>,
    return
  }
  func.func @transform_0(%arg0: i32) -> (i32, i32, i32) {
    %c0_i32 = arith.constant 0 : i32
    %c0_i32_0 = arith.constant 0 : i32
    %c0_i32_1 = arith.constant 0 : i32
    return %arg0, %c0_i32, %c0_i32_0 : i32, i32, i32
  }
  func.func @transform_1(%arg0: i32) -> (i32, i32) {
    %c0_i32 = arith.constant 0 : i32
    %c0_i32_0 = arith.constant 0 : i32
    %c0_i32_1 = arith.constant 0 : i32
    return %c0_i32, %c0_i32_0 : i32, i32
  }
  func.func @transform_2(%arg0: i32) -> (i32, i32) {
    %c0_i32 = arith.constant 0 : i32
    %c0_i32_0 = arith.constant 0 : i32
    %c0_i32_1 = arith.constant 0 : i32
    return %c0_i32, %c0_i32_0 : i32, i32
  }
  func.func @transform_3(%arg0: i32) -> (i32, i32, i32) {
    %c0_i32 = arith.constant 0 : i32
    %c0_i32_0 = arith.constant 0 : i32
    %c0_i32_1 = arith.constant 0 : i32
    %c0_i32_2 = arith.constant 0 : i32
    return %c0_i32, %c0_i32_0, %c0_i32_1 : i32, i32, i32
  }
  func.func @transform_4(%arg0: i32) -> (i32, i32) {
    %c0_i32 = arith.constant 0 : i32
    %c0_i32_0 = arith.constant 0 : i32
    %c0_i32_1 = arith.constant 0 : i32
    return %c0_i32, %c0_i32_0 : i32, i32
  }
  func.func @transform_5(%arg0: i32) -> (i32, i32, i32) {
    %c0_i32 = arith.constant 0 : i32
    %c0_i32_0 = arith.constant 0 : i32
    %c0_i32_1 = arith.constant 0 : i32
    %c0_i32_2 = arith.constant 0 : i32
    return %c0_i32, %c0_i32_0, %c0_i32_1 : i32, i32, i32
  }
  func.func @transform_6(%arg0: i32) -> (i32, i32) {
    %c0_i32 = arith.constant 0 : i32
    %c0_i32_0 = arith.constant 0 : i32
    %c0_i32_1 = arith.constant 0 : i32
    return %c0_i32, %c0_i32_0 : i32, i32
  }
  func.func @transform_7(%arg0: i32) -> i32 {
    %c0_i32 = arith.constant 0 : i32
    %c0_i32_0 = arith.constant 0 : i32
    return %c0_i32 : i32
  }
  func.func @transform_8(%arg0: i32) -> (i32, i32, i32) {
    %c0_i32 = arith.constant 0 : i32
    %c0_i32_0 = arith.constant 0 : i32
    %c0_i32_1 = arith.constant 0 : i32
    return %arg0, %c0_i32, %c0_i32_0 : i32, i32, i32
  }
}

</mosaic_0001>

<bundles_post_ra>
// kernel: tpu_custom_call.1
= control target key start
LH: loop header
LB: loop body
LE: loop exit
PB: predicated region body
PF: predicated region fallthrough
CT: control target
= control target key end

     0   :  { %s3567_s0 = inlined_call_operand.vmem [shape: bf16[2,16,64], index: 0, kind: input, shape index: {}]   ;;  %s3568_s1 = inlined_call_operand.vmem [shape: bf16[32,16], index: 1, kind: input, shape index: {}]   ;;  %s3569_s2 = inlined_call_operand.hbm [shape: bf16[64,128], index: 2, kind: input, shape index: {}]   ;;  %s3570_s3 = inlined_call_operand.hbm [shape: bf16[3,128,256], index: 3, kind: input, shape index: {}]   ;;  %s3571_s4 = inlined_call_operand.vmem [shape: f32[1,256], index: 4, kind: input, shape index: {}]   ;;  %s3572_s5 = inlined_call_operand.hbm [shape: bf16[3,256,256], index: 5, kind: input, shape index: {}]   ;;  %s3573_s6 = inlined_call_operand.vmem [shape: f32[1,256], index: 6, kind: input, shape index: {}]   ;;  %s3574_s7 = inlined_call_operand.vmem [shape: f32[2], index: 7, kind: input, shape index: {}]   ;;  %s3575_s8 = inlined_call_operand.hbm [shape: f32[2,32,256], index: 8, kind: output, shape index: {}]  }
   0x1   :  { %3579 = sst [smem:[#allocation20_spill]] %s3569_s2 }
   0x2   :  { %3580 = sst [smem:[#allocation21_spill]] %s3570_s3 }
   0x3   :  { %13 = vsyncpa [#allocation5], 0 }
   0x4   :  { %14 = vsyncpa [#allocation9], 0 }
   0x5   :  { %15 = vsyncpa [#allocation7], 0 }
   0x6   :  { %16 = vsyncpa [#allocation6], 0 }
   0x7   :  { %18 = vsyncpa [#allocation6 + $0x1], 0  ;;  %s3184_s27 = smov 0   ;;  %s3186_s28 = smov 0  }
   0x8   :  { %s3188_s29 = smov 0   ;;  %s3190_s30 = smov 0  }
   0x9 LB: > { %3581 = sst [smem:[#allocation17_spill]] %s3122_s29  ;;  %s3205_s9 = sadd.s32 4294967295, %s3126_s30   ;;  %s3126_s30 = sphi %s3190_s30, %s3592_s30   ;;  %s3122_s29 = sphi %s3188_s29, %s3594_s29   ;;  %s3118_s28 = sphi %s3186_s28, %s3596_s28   ;;  %s3114_s27 = sphi %s3184_s27, %s3595_s27  }
   0xa   : > { %s2070_s10 = sadd.s32 4294967294, %s3126_s30   ;;  %s3209_s11 = sadd.s32 1, %s3126_s30  }
   0xb   : > { %3582 = sst [smem:[#allocation18_spill]] %s3209_s11  ;;  %s204_s12 = sadd.s32 1, %s3122_s29 }
   0xc   : > { %s201_s13 = ssub.s32 %s3126_s30, %s3209_s11  ;;  %p214_p0 = scmp.ne.s32.totalorder %s3122_s29, %s3118_s28 }
   0xd   : > { %p202_p1 = scmp.eq.s32.totalorder %s201_s13, 0  ;;  %p215_p2 = scmp.eq.s32.totalorder %s3205_s9, 1 }
   0xe   : > { %p220_p3 = scmp.ne.s32.totalorder %s3118_s28, %s3114_s27  ;;  %p221_p4 = scmp.eq.s32.totalorder %s2070_s10, 1 }
   0xf   : > { %s3220_s14 = scalar_select %p202_p1, %s3122_s29, %s204_s12  }
  0x10   : > { %p3222_p5 = por %p215_p2, %p214_p0  ;;  %p3226_p6 = por %p221_p4, %p220_p3 }
  0x11   : > { %3583 = sst [smem:[#allocation19_spill]] %s3220_s14  ;;  %p2071_p7 = scmp.ge.s32.totalorder %s3126_s30, 1 }
  0x12   : > { %p228_p8 = scmp.lt.s32.totalorder %s3126_s30, 3  ;;  %p2895_p9 = scmp.eq.s32.totalorder %s3205_s9, 0 }
  0x13   : > { %s3587_s3 = sld [smem:[#allocation21_spill]]  ;;  %s3128_s21 = smov [#allocation8]  }
  0x14   : > { %p3233_p10 = pnand %p2071_p7, %p228_p8  ;;  %s258_s22 = sshll.u32 %s3128_s21, 4  ;;  %s259_s22 = int_to_ptr.vmem [resolvable:$true] %s258_s22 }
  0x15   : > { %s3589_s2 = sld [smem:[#allocation20_spill]]  ;;  %s3129_s10 = smov 128  }
  0x16   : > { %p2878_p11 = pneg %p3233_p10  ;;  %s3130_s12 = smov 8  }
  0x17   : > { %s3131_s13 = smov [#allocation4]   ;;  %s3132_s19 = smov 64  }
  0x18   : > { %p3244_p12 = pnand %p2895_p9, %p2878_p11  ;;  %s244_s18 = sshll.u32 %s3131_s13, 4  ;;  %s245_s18 = int_to_ptr.vmem [resolvable:$true] %s244_s18 }
  0x19   : > { %s256_s20 = sshll.u32 %s3587_s3, 4  ;;  %s3133_s21 = smov 4   ;;  %s257_s20 = int_to_ptr.hbm [resolvable:$true] %s256_s20 }
  0x1a   : > { %2884 = dma.hbm_to_vmem [thread:$0]  (!%p3244_p12), %s257_s20, 6144, %s259_s22, [#allocation9], %s3129_s10, %s3129_s10, %s3130_s12  }
  0x1b   : > { %s242_s26 = sshll.u32 %s3589_s2, 4  ;;  %s273_s24 = sshll.u32 %s3572_s5, 4  ;;  %s243_s26 = int_to_ptr.hbm [resolvable:$true] %s242_s26  ;;  %s274_s24 = int_to_ptr.hbm [resolvable:$true] %s273_s24 }
  0x1c   : > { %2881 = dma.hbm_to_vmem [thread:$0]  (!%p3244_p12), %s243_s26, 512, %s245_s18, [#allocation5], %s3132_s19, %s3132_s19, %s3133_s21  }
  0x1d   : > { %s3134_s25 = smov [#allocation10]   ;;  %s291_s20 = sshll.u32 %s3574_s7, 4  ;;  %s292_s20 = int_to_ptr.vmem [resolvable:$true] %s291_s20 }
  0x1e   : > { %s275_s2 = sshll.u32 %s3134_s25, 4  ;;  %s3135_s22 = smov [#allocation11]   ;;  %s276_s2 = int_to_ptr.vmem [resolvable:$true] %s275_s2 }
  0x1f   : > { %2887 = dma.hbm_to_vmem [thread:$0]  (!%p3244_p12), %s274_s24, 12288, %s276_s2, [#allocation9], %s3129_s10, %s3129_s10, %s3130_s12  }
  0x20   : > { %2890 = dma.vmem_to_smem (!%p3244_p12), %s292_s20, 16, %s3135_s22, [#allocation7]  }
  0x21   : > { %312 = sbr.rel (%p3233_p10) target bundleno = 775 (0x307), region = 52 }
  0x26   : > { %3097 = dma.done.wait (%p2895_p9), [#allocation5], 512  }
  0x27   : > { %3099 = vsyncadd (%p2895_p9), [#allocation5], 4294966784 }
  0x28   : > { %3101 = dma.done.wait (%p2895_p9), [#allocation9], 18432  }
  0x29   : > { %3103 = vsyncadd (%p2895_p9), [#allocation9], 4294948864 }
  0x2a   : > { %3105 = dma.done.wait (%p2895_p9), [#allocation7], 16  }
  0x2b   : > { %3107 = vsyncadd (%p2895_p9), [#allocation7], 4294967280 }
  0x2c   : > { %334 = sfence }
  0x2d   : > { %p363_p13 = scmp.lt.s32.totalorder %s3205_s9, 1  ;;  %v2706_v0 = vld [vmem:[#allocation4 + $0x18] sm:$0xff]  ;;  %v2701_v2 = vld [vmem:[%s3568_s1] sm:$0xff]  ;;  %vm404_vm0 = vcmask 130048   ;;  %v2702_v3 = vld [vmem:[%s3568_s1 + $0x8] sm:$0xff]  ;;  %vm464_vm1 = vcmask 523264  }
  0x2e   : > { %475 = vmatpush.bf16.msra.mxu1 %v2706_v0  ;;  %v2705_v4 = vld [vmem:[#allocation4 + $0x10] sm:$0xff]  ;;  %v2704_v5 = vld [vmem:[#allocation4 + $0x8] sm:$0xff]  ;;  %v2703_v6 = vld [vmem:[#allocation4] sm:$0xff]  ;;  %s369_s12 = sld [smem:[#allocation11]]  ;;  %vm984_vm9 = vcmask 1040384   ;;  %s360_s21 = sand.u32 1, %s3118_s28  }
  0x2f   : > { %s364_s2 = scalar_select %p363_p13, %s3205_s9, 1  ;;  %v2176_v7 = vld [vmem:[#allocation8 + $0xf0] sm:$0xf]  ;;  %v2738_v8 = vld [vmem:[#allocation8 + $0xf4] sm:$0xf0] }
  0x30   : > { %v2737_v9 = vld [vmem:[#allocation8 + $0xf4] sm:$0xf]  ;;  %v2177_v10 = vor.u32 %v2738_v8, %v2176_v7  ;;  %v2178_v11 = vld [vmem:[#allocation8 + $0xf8] sm:$0xf0]  ;;  %v2240_v12 = vld [vmem:[#allocation8 + $0x70] sm:$0xf] }
  0x31   : > { %s2699_s3 = sshll.u32 %s364_s2, 3  ;;  %v2722_v13 = vld [vmem:[#allocation8 + $0x74] sm:$0xf0]  ;;  %v2181_v14 = vor.u32 %v2737_v9, %v2178_v11  ;;  %v2721_v16 = vld [vmem:[#allocation8 + $0x74] sm:$0xf]  ;;  %s3318_s13 = sld [smem:[#allocation11 + $0x1]] }
  0x32   : > { %s367_s14 = scalar_lea.vmem %s3567_s0, %s2699_s3  ;;  %476 = vmatpush.bf16.msra.mxu1 %v2705_v4  ;;  %v2241_v15 = vor.u32 %v2722_v13, %v2240_v12  ;;  %v2242_v17 = vld [vmem:[#allocation8 + $0x78] sm:$0xf0]  ;;  %v2168_v18 = vld [vmem:[#allocation8 + $0xe0] sm:$0xf]  ;;  %632 = vmatpush.bf16.msra.mxu2 %v2177_v10  ;;  %v2736_v20 = vld [vmem:[#allocation8 + $0xe4] sm:$0xf0] }
  0x33   : > { %v2700_v1 = vld [vmem:[%s367_s14] sm:$0xff]  ;;  %v2245_v19 = vor.u32 %v2721_v16, %v2242_v17  ;;  %v2735_v21 = vld [vmem:[#allocation8 + $0xe4] sm:$0xf]  ;;  %651 = vmatpush.bf16.msra.mxu3 %v2181_v14  ;;  %v2169_v23 = vor.u32 %v2736_v20, %v2168_v18  ;;  %v2232_v25 = vld [vmem:[#allocation8 + $0x60] sm:$0xf]  ;;  %v3136_v20 = vmov 0.0  }
  0x34   : > { %418 = vmatpush.bf16.msra.mxu0 %v2700_v1  ;;  %v2170_v22 = vld [vmem:[#allocation8 + $0xe8] sm:$0xf0]  ;;  %v2720_v26 = vld [vmem:[#allocation8 + $0x64] sm:$0xf0]  ;;  %v2719_v27 = vld [vmem:[#allocation8 + $0x64] sm:$0xf] }
  0x35   : > { %v2173_v24 = vor.u32 %v2735_v21, %v2170_v22  ;;  %v2233_v29 = vor.u32 %v2720_v26, %v2232_v25  ;;  %v2234_v30 = vld [vmem:[#allocation8 + $0x68] sm:$0xf0]  ;;  %v2160_v31 = vld [vmem:[#allocation8 + $0xd0] sm:$0xf]  ;;  %v2734_v32 = vld [vmem:[#allocation8 + $0xd4] sm:$0xf0] }
  0x36   : > { %477 = vmatpush.bf16.msra.mxu1 %v2704_v5  ;;  %v2237_v33 = vor.u32 %v2719_v27, %v2234_v30  ;;  %v2733_v34 = vld [vmem:[#allocation8 + $0xd4] sm:$0xf]  ;;  %v2162_v35 = vld [vmem:[#allocation8 + $0xd8] sm:$0xf0]  ;;  %v2224_v36 = vld [vmem:[#allocation8 + $0x50] sm:$0xf]  ;;  %633 = vmatpush.bf16.msra.mxu2 %v2169_v23  ;;  %v2161_v37 = vor.u32 %v2734_v32, %v2160_v31 }
  0x37   : > { %2098 = vmatmul.msk.bf16.vlgmr.msra.gmra.mxu0 %vm404_vm0, %v2701_v2  ;;  %v2718_v38 = vld [vmem:[#allocation8 + $0x54] sm:$0xf0]  ;;  %v2717_v39 = vld [vmem:[#allocation8 + $0x54] sm:$0xf]  ;;  %v2226_v40 = vld [vmem:[#allocation8 + $0x58] sm:$0xf0]  ;;  %652 = vmatpush.bf16.msra.mxu3 %v2173_v24  ;;  %v2165_v41 = vor.u32 %v2733_v34, %v2162_v35 }
  0x38   : > { %750 = vmatpush.bf16.msrb.mxu0 %v2241_v15  ;;  %v2225_v42 = vor.u32 %v2718_v38, %v2224_v36  ;;  %v2229_v43 = vor.u32 %v2717_v39, %v2226_v40  ;;  %v2152_v49 = vld [vmem:[#allocation8 + $0xc0] sm:$0xf]  ;;  %v2732_v50 = vld [vmem:[#allocation8 + $0xc4] sm:$0xf0]  ;;  %v2731_v51 = vld [vmem:[#allocation8 + $0xc4] sm:$0xf] }
  0x39   : > { %v2153_v52 = vor.u32 %v2732_v50, %v2152_v49  ;;  %v2154_v53 = vld [vmem:[#allocation8 + $0xc8] sm:$0xf0]  ;;  %v2144_v55 = vld [vmem:[#allocation8 + $0xb0] sm:$0xf]  ;;  %v2730_v56 = vld [vmem:[#allocation8 + $0xb4] sm:$0xf0] }
  0x3a   : > { %478 = vmatpush.bf16.msra.mxu1 %v2703_v6  ;;  %634 = vmatpush.bf16.msra.mxu2 %v2161_v37  ;;  %v2157_v54 = vor.u32 %v2731_v51, %v2154_v53  ;;  %v2729_v57 = vld [vmem:[#allocation8 + $0xb4] sm:$0xf]  ;;  %v2145_v58 = vor.u32 %v2730_v56, %v2144_v55  ;;  %v2146_v59 = vld [vmem:[#allocation8 + $0xb8] sm:$0xf0]  ;;  %v2216_v61 = vld [vmem:[#allocation8 + $0x40] sm:$0xf] }
  0x3b   : > { %653 = vmatpush.bf16.msra.mxu3 %v2165_v41  ;;  %v2149_v60 = vor.u32 %v2729_v57, %v2146_v59  ;;  %v2716_v62 = vld [vmem:[#allocation8 + $0x44] sm:$0xf0]  ;;  %v2715_v63 = vld [vmem:[#allocation8 + $0x44] sm:$0xf]  ;;  %v2218_v1 = vld [vmem:[#allocation8 + $0x48] sm:$0xf0] }
  0x3c   : > { %751 = vmatpush.bf16.msrb.mxu0 %v2233_v29  ;;  %v2217_v0 = vor.u32 %v2716_v62, %v2216_v61  ;;  %v2136_v2 = vld [vmem:[#allocation8 + $0xa0] sm:$0xf]  ;;  %v2221_v4 = vor.u32 %v2715_v63, %v2218_v1  ;;  %v2727_v6 = vld [vmem:[#allocation8 + $0xa4] sm:$0xf]  ;;  %v2138_v7 = vld [vmem:[#allocation8 + $0xa8] sm:$0xf0] }
  0x3d   : > { %v2141_v8 = vor.u32 %v2727_v6, %v2138_v7  ;;  %v2208_v9 = vld [vmem:[#allocation8 + $0x30] sm:$0xf]  ;;  %v2714_v10 = vld [vmem:[#allocation8 + $0x34] sm:$0xf0]  ;;  %v2713_v11 = vld [vmem:[#allocation8 + $0x34] sm:$0xf] }
  0x3e   : > { %769 = vmatpush.bf16.msrb.mxu1 %v2245_v19  ;;  %635 = vmatpush.bf16.msra.mxu2 %v2153_v52  ;;  %v2209_v12 = vor.u32 %v2714_v10, %v2208_v9  ;;  %v2210_v13 = vld [vmem:[#allocation8 + $0x38] sm:$0xf0]  ;;  %v2128_v14 = vld [vmem:[#allocation8 + $0x90] sm:$0xf]  ;;  %v2726_v15 = vld [vmem:[#allocation8 + $0x94] sm:$0xf0] }
  0x3f   : > { %654 = vmatpush.bf16.msra.mxu3 %v2157_v54  ;;  %v2213_v16 = vor.u32 %v2713_v11, %v2210_v13  ;;  %v2129_v17 = vor.u32 %v2726_v15, %v2128_v14  ;;  %v2725_v18 = vld [vmem:[#allocation8 + $0x94] sm:$0xf]  ;;  %v2130_v19 = vld [vmem:[#allocation8 + $0x98] sm:$0xf0]  ;;  %371 = vst [vmem:[#allocation2] sm:$0x1] %v3136_v20  ;;  %v494_v11 = vstv %s369_s12 }
  0x40   : > { %752 = vmatpush.bf16.msrb.mxu0 %v2225_v42  ;;  %v2133_v21 = vor.u32 %v2725_v18, %v2130_v19  ;;  %372 = vst [vmem:[#allocation2 + $0x21] sm:$0x1] %v3136_v20  ;;  %v2200_v22 = vld [vmem:[#allocation8 + $0x20] sm:$0xf]  ;;  %v2712_v23 = vld [vmem:[#allocation8 + $0x24] sm:$0xf0] }
  0x41   : > { %v2711_v24 = vld [vmem:[#allocation8 + $0x24] sm:$0xf]  ;;  %v2201_v25 = vor.u32 %v2712_v23, %v2200_v22  ;;  %v2202_v26 = vld [vmem:[#allocation8 + $0x28] sm:$0xf0]  ;;  %v2120_v27 = vld [vmem:[#allocation8 + $0x80] sm:$0xf] }
  0x42   : > { %770 = vmatpush.bf16.msrb.mxu1 %v2237_v33  ;;  %636 = vmatpush.bf16.msra.mxu2 %v2145_v58  ;;  %v2205_v29 = vor.u32 %v2711_v24, %v2202_v26  ;;  %v2723_v31 = vld [vmem:[#allocation8 + $0x84] sm:$0xf]  ;;  %v2122_v32 = vld [vmem:[#allocation8 + $0x88] sm:$0xf0]  ;;  %v2192_v34 = vld [vmem:[#allocation8 + $0x10] sm:$0xf] }
  0x43   : > { %655 = vmatpush.bf16.msra.mxu3 %v2149_v60  ;;  %v2125_v33 = vor.u32 %v2723_v31, %v2122_v32  ;;  %v2710_v35 = vld [vmem:[#allocation8 + $0x14] sm:$0xf0]  ;;  %v2709_v36 = vld [vmem:[#allocation8 + $0x14] sm:$0xf]  ;;  %v2194_v38 = vld [vmem:[#allocation8 + $0x18] sm:$0xf0] }
  0x44   : > { %753 = vmatpush.bf16.msrb.mxu0 %v2217_v0  ;;  %v2193_v37 = vor.u32 %v2710_v35, %v2192_v34  ;;  %v2304_v39 = vld [vmem:[#allocation8 + $0x170] sm:$0xf]  ;;  %v2754_v40 = vld [vmem:[#allocation8 + $0x174] sm:$0xf0]  ;;  %v2197_v41 = vor.u32 %v2709_v36, %v2194_v38  ;;  %v2186_v50 = vld [vmem:[#allocation8 + $0x8] sm:$0xf0] }
  0x45   : > { %v2305_v42 = vor.u32 %v2754_v40, %v2304_v39  ;;  %v2296_v51 = vld [vmem:[#allocation8 + $0x160] sm:$0xf]  ;;  %v2752_v52 = vld [vmem:[#allocation8 + $0x164] sm:$0xf0]  ;;  %v2751_v55 = vld [vmem:[#allocation8 + $0x164] sm:$0xf] }
  0x46   : > { %771 = vmatpush.bf16.msrb.mxu1 %v2229_v43  ;;  %v2753_v43 = vld [vmem:[#allocation8 + $0x174] sm:$0xf]  ;;  %v2297_v54 = vor.u32 %v2752_v52, %v2296_v51  ;;  %v2298_v56 = vld [vmem:[#allocation8 + $0x168] sm:$0xf0]  ;;  %v2288_v58 = vld [vmem:[#allocation8 + $0x150] sm:$0xf] }
  0x47   : > { %2099 = vmatmul.msk.bf16.gmra.mxu0 %vm404_vm0, %v2702_v3  ;;  %v2728_v3 = vld [vmem:[#allocation8 + $0xa4] sm:$0xf0]  ;;  %656 = vmatpush.bf16.msra.mxu3 %v2141_v8  ;;  %v2301_v57 = vor.u32 %v2751_v55, %v2298_v56  ;;  %v2750_v59 = vld [vmem:[#allocation8 + $0x154] sm:$0xf0]  ;;  %v2749_v60 = vld [vmem:[#allocation8 + $0x154] sm:$0xf] }
  0x48   : > { %v2137_v5 = vor.u32 %v2728_v3, %v2136_v2  ;;  %754 = vmatpush.bf16.msrb.mxu0 %v2209_v12  ;;  %v2289_v61 = vor.u32 %v2750_v59, %v2288_v58  ;;  %v2290_v62 = vld [vmem:[#allocation8 + $0x158] sm:$0xf0]  ;;  %v2280_v0 = vld [vmem:[#allocation8 + $0x140] sm:$0xf]  ;;  %v2748_v1 = vld [vmem:[#allocation8 + $0x144] sm:$0xf0] }
  0x49   : > { %v2293_v63 = vor.u32 %v2749_v60, %v2290_v62  ;;  %v2747_v2 = vld [vmem:[#allocation8 + $0x144] sm:$0xf]  ;;  %v2281_v3 = vor.u32 %v2748_v1, %v2280_v0  ;;  %v2272_v6 = vld [vmem:[#allocation8 + $0x130] sm:$0xf]  ;;  %v2746_v7 = vld [vmem:[#allocation8 + $0x134] sm:$0xf0] }
  0x4a   : > { %772 = vmatpush.bf16.msrb.mxu1 %v2221_v4  ;;  %637 = vmatpush.bf16.msra.mxu2 %v2137_v5  ;;  %v2282_v4 = vld [vmem:[#allocation8 + $0x148] sm:$0xf0]  ;;  %v2745_v8 = vld [vmem:[#allocation8 + $0x134] sm:$0xf]  ;;  %v2273_v9 = vor.u32 %v2746_v7, %v2272_v6  ;;  %v2274_v10 = vld [vmem:[#allocation8 + $0x138] sm:$0xf0] }
  0x4b   : > { %657 = vmatpush.bf16.msra.mxu3 %v2133_v21  ;;  %v2285_v5 = vor.u32 %v2747_v2, %v2282_v4  ;;  %v2277_v12 = vor.u32 %v2745_v8, %v2274_v10  ;;  %v2264_v14 = vld [vmem:[#allocation8 + $0x120] sm:$0xf]  ;;  %v2744_v15 = vld [vmem:[#allocation8 + $0x124] sm:$0xf0]  ;;  %v2266_v19 = vld [vmem:[#allocation8 + $0x128] sm:$0xf0] }
  0x4c   : > { %755 = vmatpush.bf16.msrb.mxu0 %v2201_v25  ;;  %v2265_v18 = vor.u32 %v2744_v15, %v2264_v14  ;;  %v2256_v23 = vld [vmem:[#allocation8 + $0x110] sm:$0xf]  ;;  %v2742_v24 = vld [vmem:[#allocation8 + $0x114] sm:$0xf0]  ;;  %v2741_v26 = vld [vmem:[#allocation8 + $0x114] sm:$0xf] }
  0x4d   : > { %v2257_v25 = vor.u32 %v2742_v24, %v2256_v23  ;;  %v2739_v31 = vld [vmem:[#allocation8 + $0x104] sm:$0xf]  ;;  %v2250_v32 = vld [vmem:[#allocation8 + $0x108] sm:$0xf0]  ;;  %v2368_v62 = vld [vmem:[#allocation10 + $0x170] sm:$0xf] }
  0x4e   : > { %773 = vmatpush.bf16.msrb.mxu1 %v2213_v16  ;;  %638 = vmatpush.bf16.msra.mxu2 %v2129_v17  ;;  %v2743_v16 = vld [vmem:[#allocation8 + $0x124] sm:$0xf]  ;;  %v2253_v36 = vor.u32 %v2739_v31, %v2250_v32  ;;  %v2432_v0 = vld [vmem:[#allocation10 + $0x1f0] sm:$0xf]  ;;  %v2818_v2 = vld [vmem:[#allocation10 + $0x1f4] sm:$0xf0] }
  0x4f   : > { %658 = vmatpush.bf16.msra.mxu3 %v2125_v33  ;;  %v2269_v21 = vor.u32 %v2743_v16, %v2266_v19  ;;  %v2370_v4 = vld [vmem:[#allocation10 + $0x178] sm:$0xf0]  ;;  %v2433_v6 = vor.u32 %v2818_v2, %v2432_v0  ;;  %v2817_v8 = vld [vmem:[#allocation10 + $0x1f4] sm:$0xf]  ;;  %v2424_v14 = vld [vmem:[#allocation10 + $0x1e0] sm:$0xf] }
  0x50   : > { %756 = vmatpush.bf16.msrb.mxu0 %v2193_v37  ;;  %v2816_v16 = vld [vmem:[#allocation10 + $0x1e4] sm:$0xf0]  ;;  %v2426_v23 = vld [vmem:[#allocation10 + $0x1e8] sm:$0xf0]  ;;  %v2814_v31 = vld [vmem:[#allocation10 + $0x1d4] sm:$0xf0] }
  0x51   : > { %v2425_v19 = vor.u32 %v2816_v16, %v2424_v14  ;;  %v2797_v32 = vld [vmem:[#allocation10 + $0x154] sm:$0xf]  ;;  %v2792_v14 = vld [vmem:[#allocation10 + $0x124] sm:$0xf0]  ;;  %vm1104_vm0 = vsmask.f32 7424 }
  0x52   : > { %774 = vmatpush.bf16.msrb.mxu1 %v2205_v29  ;;  %v2248_v29 = vld [vmem:[#allocation8 + $0x100] sm:$0xf]  ;;  %v2793_v0 = vld [vmem:[#allocation10 + $0x134] sm:$0xf]  ;;  %s2082_s20 = sshll.u32 %s360_s21, 6  ;;  %s2851_s2 = sshll.u32 %s3205_s9, 6 }
  0x53   : > { %s3516_s22 = scalar_lea.vmem [#allocation12], %s2082_s20  ;;  %s1961_s11 = scalar_lea.hbm %s3575_s8, %s2851_s2 }
  0x54   : > { %s1962_s14 = sshll.u32 %s3516_s22, 4  ;;  %s1964_s17 = sshll.u32 %s1961_s11, 4  ;;  %s1963_s14 = int_to_ptr.vmem [resolvable:$true] %s1962_s14  ;;  %s1965_s17 = int_to_ptr.hbm [resolvable:$true] %s1964_s17 }
  0x55   : > { %s1950_s9 = scalar_lea.sflag [#allocation6], %s360_s21  ;;  %s3066_s23 = sshra.s32 %s1965_s17, 4  ;;  %s3067_s23 = int_to_ptr.hbm [resolvable:$true] %s3066_s23 }
  0x56   : > { %775 = vmatpush.bf16.msrb.mxu1 %v2197_v41  ;;  %s3068_s26 = scalar_lea.hbm %s3067_s23, 64  ;;  %p3073_p3 = scmp.lt.s32.totalorder %s3067_s23, %s3575_s8 }
  0x57   : > { %p3069_p0 = scmp.ne.s32.totalorder %s3067_s23, %s3068_s26 }
  0x59   : > { %p3070_p1 = pnand %p3069_p0, %p3222_p5 }
  0x5b   : > { %p3071_p2 = pneg %p3070_p1 }
  0xb4   : > { %v420_v28 = vpop.f32.mrf.mxu0 }
  0xbc   : > { %v422_v44 = vpop.f32.mrf.mxu0 }
  0xbd   : > { %v430_v45 = vpack.c.bf16 %v422_v44, %v420_v28  ;;  %v2724_v28 = vld [vmem:[#allocation8 + $0x84] sm:$0xf0]  ;;  %v2306_v44 = vld [vmem:[#allocation8 + $0x178] sm:$0xf0] }
  0xbe   : > { %v2121_v30 = vor.u32 %v2724_v28, %v2120_v27  ;;  %v2258_v27 = vld [vmem:[#allocation8 + $0x118] sm:$0xf0] }
  0xbf   : > { %2116 = vmatmul.msk.bf16.vlgmr.msra.gmra.mxu1 %vm464_vm1, %v430_v45  ;;  %v2309_v45 = vor.u32 %v2753_v43, %v2306_v44  ;;  %v2261_v28 = vor.u32 %v2741_v26, %v2258_v27  ;;  %v2352_v27 = vld [vmem:[#allocation10 + $0x150] sm:$0xf] }
  0xc0   : > { %639 = vmatpush.bf16.msra.mxu2 %v2121_v30  ;;  %v2740_v30 = vld [vmem:[#allocation8 + $0x104] sm:$0xf0] }
  0xc1   : > { %910 = vmatpush.bf16.msrb.mxu3 %v2309_v45  ;;  %v2249_v34 = vor.u32 %v2740_v30, %v2248_v29  ;;  %v2416_v29 = vld [vmem:[#allocation10 + $0x1d0] sm:$0xf] }
  0xc4   : > { %v425_v46 = vpop.f32.mrf.mxu0  ;;  %891 = vmatpush.bf16.msrb.mxu2 %v2305_v42 }
  0xc5   : > { %911 = vmatpush.bf16.msrb.mxu3 %v2301_v57 }
  0xc8   : > { %892 = vmatpush.bf16.msrb.mxu2 %v2297_v54 }
  0xc9   : > { %912 = vmatpush.bf16.msrb.mxu3 %v2293_v63  ;;  %v2802_v63 = vld [vmem:[#allocation10 + $0x174] sm:$0xf0] }
  0xca   : > { %v2369_v1 = vor.u32 %v2802_v63, %v2368_v62  ;;  %v2810_v63 = vld [vmem:[#allocation10 + $0x1b4] sm:$0xf0] }
  0xcc   : > { %v427_v47 = vpop.f32.mrf.mxu0  ;;  %893 = vmatpush.bf16.msrb.mxu2 %v2289_v61 }
  0xcd   : > { %v431_v48 = vpack.c.bf16 %v427_v47, %v425_v46  ;;  %v2184_v46 = vld [vmem:[#allocation8] sm:$0xf]  ;;  %v2708_v47 = vld [vmem:[#allocation8 + $0x4] sm:$0xf0]  ;;  %913 = vmatpush.bf16.msrb.mxu3 %v2285_v5  ;;  %v373_v5 = vlaneseq }
  0xce   : > { %v2185_v49 = vor.u32 %v2708_v47, %v2184_v46 }
  0xcf   : > { %2117 = vmatmul.msk.bf16.gmra.mxu1 %vm464_vm1, %v431_v48  ;;  %v2707_v48 = vld [vmem:[#allocation8 + $0x4] sm:$0xf]  ;;  %vm3300_vm6 = vcmp.lt.s32.totalorder %v373_v5, 256  ;;  %v2402_v5 = vld [vmem:[#allocation10 + $0x1b8] sm:$0xf0]  ;;  %vm1668_vm1 = vcmask 1046528  }
  0xd0   : > { %v2189_v53 = vor.u32 %v2707_v48, %v2186_v50  ;;  %757 = vmatpush.bf16.msrb.mxu0 %v2185_v49  ;;  %894 = vmatpush.bf16.msrb.mxu2 %v2281_v3  ;;  %v2801_v3 = vld [vmem:[#allocation10 + $0x174] sm:$0xf]  ;;  %377 = vst.msk [vmem:[#allocation3] ss:$8 sm:$0x3] %vm3300_vm6, %v3136_v20 }
  0xd1   : > { %914 = vmatpush.bf16.msrb.mxu3 %v2277_v12  ;;  %v2373_v7 = vor.u32 %v2801_v3, %v2370_v4  ;;  %v2360_v12 = vld [vmem:[#allocation10 + $0x160] sm:$0xf]  ;;  %380 = vst.msk [vmem:[#allocation3 + $0x41] ss:$8 sm:$0x3] %vm3300_vm6, %v3136_v20 }
  0xd2   : > { %776 = vmatpush.bf16.msrb.mxu1 %v2189_v53  ;;  %v2796_v20 = vld [vmem:[#allocation10 + $0x144] sm:$0xf0]  ;;  %v2809_v4 = vld [vmem:[#allocation10 + $0x1b4] sm:$0xf] }
  0xd4   : > { %895 = vmatpush.bf16.msrb.mxu2 %v2273_v9  ;;  %v2434_v9 = vld [vmem:[#allocation10 + $0x1f8] sm:$0xf0]  ;;  %1309 = vmatpush.bf16.msra.mxu0 %v2369_v1 }
  0xd5   : > { %915 = vmatpush.bf16.msrb.mxu3 %v2269_v21  ;;  %v2437_v10 = vor.u32 %v2817_v8, %v2434_v9  ;;  %v2338_v1 = vld [vmem:[#allocation10 + $0x138] sm:$0xf0]  ;;  %v2405_v8 = vor.u32 %v2809_v4, %v2402_v5  ;;  %v2803_v4 = vld [vmem:[#allocation10 + $0x184] sm:$0xf] }
  0xd6   : > { %1328 = vmatpush.bf16.msra.mxu1 %v2433_v6  ;;  %v2341_v3 = vor.u32 %v2793_v0, %v2338_v1 }
  0xd8   : > { %896 = vmatpush.bf16.msrb.mxu2 %v2265_v18  ;;  %v2362_v18 = vld [vmem:[#allocation10 + $0x168] sm:$0xf0] }
  0xd9   : > { %916 = vmatpush.bf16.msrb.mxu3 %v2261_v28  ;;  %v2798_v28 = vld [vmem:[#allocation10 + $0x154] sm:$0xf0] }
  0xda   : > { %1329 = vmatpush.bf16.msra.mxu1 %v2425_v19  ;;  %v2353_v30 = vor.u32 %v2798_v28, %v2352_v27  ;;  %v2808_v19 = vld [vmem:[#allocation10 + $0x1a4] sm:$0xf0]  ;;  %v2394_v28 = vld [vmem:[#allocation10 + $0x1a8] sm:$0xf0] }
  0xdc   : > { %897 = vmatpush.bf16.msrb.mxu2 %v2257_v25 }
  0xdd   : > { %917 = vmatpush.bf16.msrb.mxu3 %v2253_v36  ;;  %v2417_v36 = vor.u32 %v2814_v31, %v2416_v29  ;;  %v3330_v29 = vstv %s3318_s13  ;;  %s3072_s13 = scalar_lea.hbm %s3575_s8, 128 }
  0xde   : > { %p3074_p4 = scmp.lt.s32.totalorder %s3072_s13, %s3068_s26 }
  0xdf   : > { %1330 = vmatpush.bf16.msra.mxu1 %v2417_v36 }
  0xe0   : > { %898 = vmatpush.bf16.msrb.mxu2 %v2249_v34  ;;  %p3075_p7 = por %p3074_p4, %p3073_p3 }
  0xe2   : > { %p3076_p8 = pnand %p3075_p7, %p3071_p2 }
 0x13c   : > { %v480_v13 = vpop.f32.mrf.mxu1 }
 0x13d   : > { %vm490_vm2 = vcmp.gt.f32.partialorder %v480_v13, 0.0  ;;  %v495_v17 = vmul.f32 %v494_v11, %v480_v13 }
 0x13f   : > { %v499_v22 = vsel %vm490_vm2, %v480_v13, %v495_v17  ;;  %v2800_v13 = vld [vmem:[#allocation10 + $0x164] sm:$0xf0]  ;;  %v2799_v17 = vld [vmem:[#allocation10 + $0x164] sm:$0xf] }
 0x140   : > { %503 = vst [vmem:[#allocation2 + $0x1] sm:$0xff] %v499_v22  ;;  %v2361_v15 = vor.u32 %v2800_v13, %v2360_v12  ;;  %v2365_v21 = vor.u32 %v2799_v17, %v2362_v18  ;;  %v2328_v13 = vld [vmem:[#allocation10 + $0x120] sm:$0xf] }
 0x141   : > { %v2329_v18 = vor.u32 %v2792_v14, %v2328_v13  ;;  %v2496_v14 = vld [vmem:[#allocation10 + $0x70] sm:$0xf] }
 0x142   : > { %1310 = vmatpush.bf16.msra.mxu0 %v2361_v15  ;;  %v2392_v15 = vld [vmem:[#allocation10 + $0x1a0] sm:$0xf] }
 0x144   : > { %v482_v33 = vpop.f32.mrf.mxu1 }
 0x145   : > { %vm491_vm3 = vcmp.gt.f32.partialorder %v482_v33, 0.0  ;;  %v496_v35 = vmul.f32 %v494_v11, %v482_v33 }
 0x146   : > { %1311 = vmatpush.bf16.msra.mxu0 %v2353_v30 }
 0x147   : > { %v500_v37 = vsel %vm491_vm3, %v482_v33, %v496_v35  ;;  %v507_v42 = vld [vmem:[#allocation2] sm:$0xff]  ;;  %v2354_v33 = vld [vmem:[#allocation10 + $0x158] sm:$0xf0] }
 0x148   : > { %504 = vst [vmem:[#allocation2 + $0x9] sm:$0xff] %v500_v37  ;;  %v533_v38 = vpack.c.bf16 %v500_v37, %v499_v22  ;;  %v2815_v22 = vld [vmem:[#allocation10 + $0x1e4] sm:$0xf]  ;;  %v2357_v37 = vor.u32 %v2797_v32, %v2354_v33  ;;  %v2320_v33 = vld [vmem:[#allocation10 + $0x110] sm:$0xf] }
 0x149   : > { %v2429_v26 = vor.u32 %v2815_v22, %v2426_v23  ;;  %v2330_v22 = vld [vmem:[#allocation10 + $0x128] sm:$0xf0] }
 0x14a   : > { %640 = vmatmul.bf16.vlgmr.msra.gmra.mxu2 %v533_v38  ;;  %659 = vmatmul.bf16.vlgmr.msra.gmra.mxu3 %v533_v38  ;;  %v2813_v38 = vld [vmem:[#allocation10 + $0x1d4] sm:$0xf] }
 0x14b   : > { %1347 = vmatpush.bf16.msra.mxu2 %v2373_v7  ;;  %1366 = vmatpush.bf16.msra.mxu3 %v2437_v10 }
 0x14c   : > { %v485_v39 = vpop.f32.mrf.mxu1 }
 0x14d   : > { %vm492_vm4 = vcmp.gt.f32.partialorder %v485_v39, 0.0  ;;  %v497_v40 = vmul.f32 %v494_v11, %v485_v39 }
 0x14f   : > { %v501_v41 = vsel %vm492_vm4, %v485_v39, %v497_v40  ;;  %v508_v43 = vld [vmem:[#allocation2 + $0x8] sm:$0xff]  ;;  %1348 = vmatpush.bf16.msra.mxu2 %v2365_v21  ;;  %1367 = vmatpush.bf16.msra.mxu3 %v2429_v26  ;;  %v2418_v39 = vld [vmem:[#allocation10 + $0x1d8] sm:$0xf0]  ;;  %v2791_v21 = vld [vmem:[#allocation10 + $0x124] sm:$0xf] }
 0x150   : > { %505 = vst [vmem:[#allocation2 + $0x11] sm:$0xff] %v501_v41  ;;  %v511_v44 = vpack.c.bf16 %v508_v43, %v507_v42  ;;  %v788_v53 = vld [vmem:[#allocation2 + $0x2] sm:$0xff]  ;;  %v2421_v40 = vor.u32 %v2813_v38, %v2418_v39  ;;  %v2408_v42 = vld [vmem:[#allocation10 + $0x1c0] sm:$0xf]  ;;  %v2333_v27 = vor.u32 %v2791_v21, %v2330_v22  ;;  %v2789_v38 = vld [vmem:[#allocation10 + $0x114] sm:$0xf] }
 0x151   : > { %v2322_v39 = vld [vmem:[#allocation10 + $0x118] sm:$0xf0] }
 0x152   : > { %758 = vmatmul.bf16.vlgmr.msrb.gmra.mxu0 %v511_v44  ;;  %777 = vmatmul.bf16.vlgmr.msrb.gmra.mxu1 %v511_v44 }
 0x153   : > { %1349 = vmatpush.bf16.msra.mxu2 %v2357_v37  ;;  %1368 = vmatpush.bf16.msra.mxu3 %v2421_v40  ;;  %v2806_v37 = vld [vmem:[#allocation10 + $0x194] sm:$0xf0] }
 0x154   : > { %v487_v45 = vpop.f32.mrf.mxu1 }
 0x155   : > { %vm493_vm5 = vcmp.gt.f32.partialorder %v487_v45, 0.0  ;;  %v498_v46 = vmul.f32 %v494_v11, %v487_v45 }
 0x157   : > { %v502_v47 = vsel %vm493_vm5, %v487_v45, %v498_v46  ;;  %v509_v49 = vld [vmem:[#allocation2 + $0x10] sm:$0xff]  ;;  %v2812_v46 = vld [vmem:[#allocation10 + $0x1c4] sm:$0xf0] }
 0x158   : > { %506 = vst [vmem:[#allocation2 + $0x19] sm:$0xff] %v502_v47  ;;  %v534_v48 = vpack.c.bf16 %v502_v47, %v501_v41  ;;  %v789_v52 = vld [vmem:[#allocation2 + $0xa] sm:$0xff]  ;;  %v2344_v41 = vld [vmem:[#allocation10 + $0x140] sm:$0xf]  ;;  %v2795_v47 = vld [vmem:[#allocation10 + $0x144] sm:$0xf] }
 0x159   : > { %v792_v54 = vpack.c.bf16 %v789_v52, %v788_v53  ;;  %v2345_v45 = vor.u32 %v2796_v20, %v2344_v41  ;;  %v2410_v52 = vld [vmem:[#allocation10 + $0x1c8] sm:$0xf0]  ;;  %v937_v53 = vld [vmem:[%s3571_s4] sm:$0x3]  ;;  %v2805_v20 = vld [vmem:[#allocation10 + $0x194] sm:$0xf] }
 0x15a   : > { %645 = vmatmul.bf16.gmra.mxu2 %v534_v48  ;;  %664 = vmatmul.bf16.gmra.mxu3 %v534_v48  ;;  %v2346_v48 = vld [vmem:[#allocation10 + $0x148] sm:$0xf0]  ;;  %v3323_v6 = vperm.slane %v937_v53, 0  ;;  %v3325_v7 = vperm.slane %v937_v53, 1 }
 0x15b   : > { %1312 = vmatpush.bf16.msra.mxu0 %v2345_v45 }
 0x15f   : > { %v510_v50 = vld [vmem:[#allocation2 + $0x18] sm:$0xff] }
 0x160   : > { %v512_v51 = vpack.c.bf16 %v510_v50, %v509_v49  ;;  %v790_v55 = vld [vmem:[#allocation2 + $0x12] sm:$0xff]  ;;  %v791_v56 = vld [vmem:[#allocation2 + $0x1a] sm:$0xff]  ;;  %v2409_v49 = vor.u32 %v2812_v46, %v2408_v42  ;;  %v2349_v50 = vor.u32 %v2795_v47, %v2346_v48  ;;  %v2325_v47 = vor.u32 %v2789_v38, %v2322_v39 }
 0x161   : > { %v793_v57 = vpack.c.bf16 %v791_v56, %v790_v55  ;;  %v2336_v55 = vld [vmem:[#allocation10 + $0x130] sm:$0xf]  ;;  %v2794_v56 = vld [vmem:[#allocation10 + $0x134] sm:$0xf0]  ;;  %v2386_v42 = vld [vmem:[#allocation10 + $0x198] sm:$0xf0] }
 0x162   : > { %763 = vmatmul.bf16.gmra.mxu0 %v512_v51  ;;  %782 = vmatmul.bf16.gmra.mxu1 %v512_v51  ;;  %v2811_v51 = vld [vmem:[#allocation10 + $0x1c4] sm:$0xf]  ;;  %v2337_v62 = vor.u32 %v2794_v56, %v2336_v55  ;;  %v2389_v48 = vor.u32 %v2805_v20, %v2386_v42  ;;  %v2804_v56 = vld [vmem:[#allocation10 + $0x184] sm:$0xf0]  ;;  %v2490_v42 = vld [vmem:[#allocation10 + $0x68] sm:$0xf0] }
 0x163   : > { %1331 = vmatpush.bf16.msra.mxu1 %v2409_v49  ;;  %1350 = vmatpush.bf16.msra.mxu2 %v2349_v50  ;;  %v2312_v49 = vld [vmem:[#allocation10 + $0x100] sm:$0xf]  ;;  %v2788_v50 = vld [vmem:[#allocation10 + $0x104] sm:$0xf0]  ;;  %v2767_v39 = vld [vmem:[#allocation10 + $0x64] sm:$0xf] }
 0x164   : > { %1313 = vmatpush.bf16.msra.mxu0 %v2337_v62  ;;  %v2313_v55 = vor.u32 %v2788_v50, %v2312_v49  ;;  %v2314_v62 = vld [vmem:[#allocation10 + $0x108] sm:$0xf0]  ;;  %v2784_v38 = vld [vmem:[#allocation10 + $0xe4] sm:$0xf0]  ;;  %v2493_v49 = vor.u32 %v2767_v39, %v2490_v42 }
 0x165   : > { %v2554_v50 = vld [vmem:[#allocation10 + $0xe8] sm:$0xf0] }
 0x167   : > { %1351 = vmatpush.bf16.msra.mxu2 %v2341_v3 }
 0x168   : > { %1314 = vmatpush.bf16.msra.mxu0 %v2329_v18  ;;  %v2786_v18 = vld [vmem:[#allocation10 + $0xf4] sm:$0xf0] }
 0x16a   : > { %899 = vmatmul.bf16.vlgmr.msrb.gmra.mxu2 %v792_v54  ;;  %918 = vmatmul.bf16.vlgmr.msrb.gmra.mxu3 %v792_v54  ;;  %v2413_v54 = vor.u32 %v2811_v51, %v2410_v52  ;;  %v2376_v51 = vld [vmem:[#allocation10 + $0x180] sm:$0xf] }
 0x16b   : > { %1352 = vmatpush.bf16.msra.mxu2 %v2333_v27 }
 0x16c   : > { %1369 = vmatpush.bf16.msra.mxu3 %v2413_v54 }
 0x16f   : > { %1353 = vmatpush.bf16.msra.mxu2 %v2325_v47 }
 0x170   : > { %1370 = vmatpush.bf16.msra.mxu3 %v2405_v8 }
 0x17a   : > { %904 = vmatmul.bf16.gmra.mxu2 %v793_v57  ;;  %923 = vmatmul.bf16.gmra.mxu3 %v793_v57  ;;  %v2400_v57 = vld [vmem:[#allocation10 + $0x1b0] sm:$0xf] }
 0x17b   : > { %v2401_v2 = vor.u32 %v2810_v63, %v2400_v57  ;;  %v2787_v57 = vld [vmem:[#allocation10 + $0x104] sm:$0xf] }
 0x17c   : > { %v2317_v3 = vor.u32 %v2787_v57, %v2314_v62  ;;  %v2766_v62 = vld [vmem:[#allocation10 + $0x54] sm:$0xf0] }
 0x17d   : > { %1332 = vmatpush.bf16.msra.mxu1 %v2401_v2  ;;  %v2377_v2 = vor.u32 %v2804_v56, %v2376_v51  ;;  %v2480_v51 = vld [vmem:[#allocation10 + $0x50] sm:$0xf] }
 0x17e   : > { %1354 = vmatpush.bf16.msra.mxu2 %v2317_v3 }
 0x1cd   : > { %v3292_v58 = vpop.f32.mrf.mxu2  ;;  %v3294_v59 = vpop.f32.mrf.mxu3 }
 0x1cf   : > { %v759_v34 = vpop.f32.mrf.mxu0  ;;  %v778_v35 = vpop.f32.mrf.mxu1 }
 0x1d0   : > { %v760_v9 = vadd.f32 %v759_v34, %v3292_v58  ;;  %v779_v10 = vadd.f32 %v778_v35, %v3294_v59  ;;  %v2393_v58 = vor.u32 %v2808_v19, %v2392_v15  ;;  %v2807_v59 = vld [vmem:[#allocation10 + $0x1a4] sm:$0xf]  ;;  %v2790_v34 = vld [vmem:[#allocation10 + $0x114] sm:$0xf0]  ;;  %v2384_v35 = vld [vmem:[#allocation10 + $0x190] sm:$0xf] }
 0x1d1   : > { %v2397_v30 = vor.u32 %v2807_v59, %v2394_v28  ;;  %v2321_v36 = vor.u32 %v2790_v34, %v2320_v33  ;;  %v2385_v46 = vor.u32 %v2806_v37, %v2384_v35  ;;  %v2770_v15 = vld [vmem:[#allocation10 + $0x74] sm:$0xf0]  ;;  %v2769_v19 = vld [vmem:[#allocation10 + $0x74] sm:$0xf]  ;;  %v2552_v37 = vld [vmem:[#allocation10 + $0xe0] sm:$0xf] }
 0x1d2   : > { %1333 = vmatpush.bf16.msra.mxu1 %v2393_v58  ;;  %v2553_v20 = vor.u32 %v2784_v38, %v2552_v37 }
 0x1d3   : > { %1371 = vmatpush.bf16.msra.mxu3 %v2397_v30  ;;  %1315 = vmatpush.bf16.msra.mxu0 %v2321_v36  ;;  %v2562_v30 = vld [vmem:[#allocation10 + $0xf8] sm:$0xf0] }
 0x1d5   : > { %v3296_v60 = vpop.f32.mrf.mxu2  ;;  %v3298_v61 = vpop.f32.mrf.mxu3 }
 0x1d6   : > { %1334 = vmatpush.bf16.msra.mxu1 %v2385_v46 }
 0x1d7   : > { %v761_v11 = vpop.f32.mrf.mxu0  ;;  %v780_v12 = vpop.f32.mrf.mxu1  ;;  %1372 = vmatpush.bf16.msra.mxu3 %v2389_v48  ;;  %1316 = vmatpush.bf16.msra.mxu0 %v2313_v55 }
 0x1d8   : > { %v762_v45 = vadd.f32 %v761_v11, %v3296_v60  ;;  %v781_v52 = vadd.f32 %v780_v12, %v3298_v61  ;;  %v2378_v61 = vld [vmem:[#allocation10 + $0x188] sm:$0xf0] }
 0x1d9   : > { %v2381_v11 = vor.u32 %v2803_v4, %v2378_v61  ;;  %v2782_v4 = vld [vmem:[#allocation10 + $0xd4] sm:$0xf0]  ;;  %v2765_v61 = vld [vmem:[#allocation10 + $0x54] sm:$0xf] }
 0x1da   : > { %1335 = vmatpush.bf16.msra.mxu1 %v2377_v2 }
 0x1db   : > { %1373 = vmatpush.bf16.msra.mxu3 %v2381_v11  ;;  %v2546_v11 = vld [vmem:[#allocation10 + $0xd8] sm:$0xf0] }
 0x1dd   : > { %v3304_v24 = vpop.f32.mrf.mxu2  ;;  %v3306_v25 = vpop.f32.mrf.mxu3 }
 0x1df   : > { %v764_v5 = vpop.f32.mrf.mxu0  ;;  %v783_v8 = vpop.f32.mrf.mxu1 }
 0x1e0   : > { %v765_v58 = vadd.f32 %v764_v5, %v3304_v24  ;;  %v784_v27 = vadd.f32 %v783_v8, %v3306_v25  ;;  %v2482_v5 = vld [vmem:[#allocation10 + $0x58] sm:$0xf0]  ;;  %v2781_v8 = vld [vmem:[#allocation10 + $0xd4] sm:$0xf] }
 0x1e5   : > { %v3314_v43 = vpop.f32.mrf.mxu2  ;;  %v3316_v44 = vpop.f32.mrf.mxu3 }
 0x1e7   : > { %v785_v2 = vpop.f32.mrf.mxu1 }
 0x1ed   : > { %v900_v16 = vpop.f32.mrf.mxu2  ;;  %v919_v17 = vpop.f32.mrf.mxu3 }
 0x1ee   : > { %v929_v23 = vadd.f32 %v900_v16, %v760_v9  ;;  %v930_v26 = vadd.f32 %v919_v17, %v779_v10  ;;  %v2497_v16 = vor.u32 %v2770_v15, %v2496_v14  ;;  %v2560_v17 = vld [vmem:[#allocation10 + $0xf0] sm:$0xf] }
 0x1ef   : > { %v2561_v59 = vor.u32 %v2786_v18, %v2560_v17  ;;  %v2764_v17 = vld [vmem:[#allocation10 + $0x44] sm:$0xf0] }
 0x1f0   : > { %v943_v31 = vadd.f32 %v3323_v6, %v929_v23  ;;  %v944_v32 = vadd.f32 %v3325_v7, %v930_v26  ;;  %v2498_v23 = vld [vmem:[#allocation10 + $0x78] sm:$0xf0]  ;;  %v2785_v26 = vld [vmem:[#allocation10 + $0xf4] sm:$0xf]  ;;  %1545 = vmatpush.bf16.msrb.mxu0 %v2497_v16  ;;  %v2472_v16 = vld [vmem:[#allocation10 + $0x40] sm:$0xf] }
 0x1f1   : > { %v2501_v28 = vor.u32 %v2769_v19, %v2498_v23  ;;  %v2565_v35 = vor.u32 %v2785_v26, %v2562_v30  ;;  %1564 = vmatpush.bf16.msrb.mxu1 %v2561_v59  ;;  %v2536_v23 = vld [vmem:[#allocation10 + $0xc0] sm:$0xf]  ;;  %v2763_v59 = vld [vmem:[#allocation10 + $0x44] sm:$0xf] }
 0x1f2   : > { %vm951_vm7 = vcmp.gt.f32.partialorder %v943_v31, 0.0  ;;  %v960_v40 = vmul.f32 %v3330_v29, %v943_v31  ;;  %vm952_vm8 = vcmp.gt.f32.partialorder %v944_v32, 0.0  ;;  %v961_v41 = vmul.f32 %v3330_v29, %v944_v32 }
 0x1f3   : > { %1583 = vmatpush.bf16.msrb.mxu2 %v2501_v28  ;;  %1602 = vmatpush.bf16.msrb.mxu3 %v2565_v35  ;;  %v2779_v35 = vld [vmem:[#allocation10 + $0xc4] sm:$0xf] }
 0x1f4   : > { %v3338_v53 = vsel %vm951_vm7, %v943_v31, %v960_v40  ;;  %v3340_v54 = vsel %vm952_vm8, %v944_v32, %v961_v41  ;;  %v2488_v31 = vld [vmem:[#allocation10 + $0x60] sm:$0xf]  ;;  %v2768_v32 = vld [vmem:[#allocation10 + $0x64] sm:$0xf0] }
 0x1f5   : > { %v985_v63 = vrot.slane %v3338_v53, 7  ;;  %v986_v60 = vrot.slane %v3340_v54, 7  ;;  %v902_v0 = vpop.f32.mrf.mxu2  ;;  %v921_v1 = vpop.f32.mrf.mxu3  ;;  %v2489_v36 = vor.u32 %v2768_v32, %v2488_v31  ;;  %1565 = vmatpush.bf16.msrb.mxu1 %v2553_v20  ;;  %v2481_v54 = vor.u32 %v2766_v62, %v2480_v51  ;;  %v2474_v32 = vld [vmem:[#allocation10 + $0x48] sm:$0xf0]  ;;  %v2466_v51 = vld [vmem:[#allocation10 + $0x38] sm:$0xf0] }
 0x1f6   : > { %v931_v9 = vadd.f32 %v902_v0, %v762_v45  ;;  %v932_v10 = vadd.f32 %v921_v1, %v781_v52  ;;  %v2783_v45 = vld [vmem:[#allocation10 + $0xe4] sm:$0xf]  ;;  %v2544_v0 = vld [vmem:[#allocation10 + $0xd0] sm:$0xf]  ;;  %v766_v1 = vpop.f32.mrf.mxu0  ;;  %v2473_v31 = vor.u32 %v2764_v17, %v2472_v16  ;;  %v2777_v62 = vld [vmem:[#allocation10 + $0xb4] sm:$0xf] }
 0x1f7   : > { %1009 = vst [vmem:[#allocation3] sm:$0xfe] %v985_v63  ;;  %1546 = vmatpush.bf16.msrb.mxu0 %v2489_v36  ;;  %v2557_v57 = vor.u32 %v2783_v45, %v2554_v50  ;;  %1584 = vmatpush.bf16.msrb.mxu2 %v2493_v49  ;;  %v2538_v36 = vld [vmem:[#allocation10 + $0xc8] sm:$0xf0]  ;;  %v2464_v45 = vld [vmem:[#allocation10 + $0x30] sm:$0xf] }
 0x1f8   : > { %1010 = vst [vmem:[#allocation3 + $0x8] sm:$0xfe] %v986_v60  ;;  %v945_v12 = vadd.f32 %v3323_v6, %v931_v9  ;;  %v946_v13 = vadd.f32 %v3325_v7, %v932_v10  ;;  %v2778_v49 = vld [vmem:[#allocation10 + $0xb4] sm:$0xf0] }
 0x1f9   : > { %1603 = vmatpush.bf16.msrb.mxu3 %v2557_v57 }
 0x1fa   : > { %vm953_vm10 = vcmp.gt.f32.partialorder %v945_v12, 0.0  ;;  %v962_v21 = vmul.f32 %v3330_v29, %v945_v12  ;;  %vm954_vm11 = vcmp.gt.f32.partialorder %v946_v13, 0.0  ;;  %v963_v22 = vmul.f32 %v3330_v29, %v946_v13 }
 0x1fb   : > { %1547 = vmatpush.bf16.msrb.mxu0 %v2481_v54  ;;  %v2776_v54 = vld [vmem:[#allocation10 + $0xa4] sm:$0xf0] }
 0x1fc   : > { %v3354_v33 = vsel %vm953_vm10, %v945_v12, %v962_v21  ;;  %v3356_v34 = vsel %vm954_vm11, %v946_v13, %v963_v22  ;;  %v767_v12 = vadd.f32 %v766_v1, %v3314_v43  ;;  %v786_v13 = vadd.f32 %v785_v2, %v3316_v44  ;;  %v2456_v1 = vld [vmem:[#allocation10 + $0x20] sm:$0xf] }
 0x1fd   : > { %v987_v40 = vrot.slane %v3354_v33, 7  ;;  %v989_v24 = vrot.slane %v3356_v34, 7  ;;  %v905_v25 = vpop.f32.mrf.mxu2  ;;  %v924_v41 = vpop.f32.mrf.mxu3  ;;  %v2485_v21 = vor.u32 %v2765_v61, %v2482_v5  ;;  %v2549_v22 = vor.u32 %v2781_v8, %v2546_v11  ;;  %v2520_v61 = vld [vmem:[#allocation10 + $0xa0] sm:$0xf]  ;;  %v2759_v8 = vld [vmem:[#allocation10 + $0x24] sm:$0xf] }
 0x1fe   : > { %v933_v46 = vadd.f32 %v905_v25, %v765_v58  ;;  %v934_v47 = vadd.f32 %v924_v41, %v784_v27  ;;  %v1063_v48 = vld [vmem:[#allocation3] sm:$0xfe]  ;;  %v2780_v27 = vld [vmem:[#allocation10 + $0xc4] sm:$0xf0]  ;;  %v2541_v34 = vor.u32 %v2779_v35, %v2538_v36  ;;  %v2514_v36 = vld [vmem:[#allocation10 + $0x98] sm:$0xf0] }
 0x1ff   : > { %v3365_v52 = vsel %vm984_vm9, %v985_v63, %v987_v40  ;;  %v3372_v55 = vsel %vm984_vm9, %v986_v60, %v989_v24  ;;  %v1064_v56 = vld [vmem:[#allocation3 + $0x8] sm:$0xfe]  ;;  %v2545_v60 = vor.u32 %v2782_v4, %v2544_v0  ;;  %1585 = vmatpush.bf16.msrb.mxu2 %v2485_v21  ;;  %1604 = vmatpush.bf16.msrb.mxu3 %v2549_v22  ;;  %v2760_v4 = vld [vmem:[#allocation10 + $0x24] sm:$0xf0]  ;;  %v1621_v16 = vld [vmem:[#allocation3] sm:$0xfc] }
 0x200   : > { %v947_v3 = vadd.f32 %v3323_v6, %v933_v46  ;;  %v948_v53 = vadd.f32 %v3325_v7, %v934_v47  ;;  %v3377_v63 = vpack.c.bf16 %v3365_v52, %v1063_v48  ;;  %v3385_v15 = vpack.c.bf16 %v3372_v55, %v1064_v56  ;;  %1548 = vmatpush.bf16.msrb.mxu0 %v2473_v31  ;;  %v2530_v0 = vld [vmem:[#allocation10 + $0xb8] sm:$0xf0]  ;;  %v2773_v35 = vld [vmem:[#allocation10 + $0x94] sm:$0xf] }
 0x201   : > { %1566 = vmatpush.bf16.msrb.mxu1 %v2545_v60  ;;  %v2537_v33 = vor.u32 %v2780_v27, %v2536_v23  ;;  %v2477_v47 = vor.u32 %v2763_v59, %v2474_v32  ;;  %v2457_v5 = vor.u32 %v2760_v4, %v2456_v1  ;;  %v2758_v23 = vld [vmem:[#allocation10 + $0x14] sm:$0xf0]  ;;  %v2450_v31 = vld [vmem:[#allocation10 + $0x18] sm:$0xf0] }
 0x202   : > { %vm955_vm12 = vcmp.gt.f32.partialorder %v947_v3, 0.0  ;;  %v964_v9 = vmul.f32 %v3330_v29, %v947_v3  ;;  %vm956_vm13 = vcmp.gt.f32.partialorder %v948_v53, 0.0  ;;  %v965_v10 = vmul.f32 %v3330_v29, %v948_v53 }
 0x203   : > { %v1108_v14 = vshll.u32 %v3377_v63, 16  ;;  %v1106_v39 = vshrl.u32 %v3377_v63, 16  ;;  %v1118_v25 = vshrl.u32 %v3385_v15, 16  ;;  %v1120_v42 = vshll.u32 %v3385_v15, 16  ;;  %1586 = vmatpush.bf16.msrb.mxu2 %v2477_v47  ;;  %1605 = vmatpush.bf16.msrb.mxu3 %v2541_v34  ;;  %v2504_v47 = vld [vmem:[#allocation10 + $0x80] sm:$0xf] }
 0x204   : > { %v3387_v18 = vsel %vm955_vm12, %v947_v3, %v964_v9  ;;  %v3389_v19 = vsel %vm956_vm13, %v948_v53, %v965_v10  ;;  %v2533_v53 = vor.u32 %v2777_v62, %v2530_v0  ;;  %v2458_v9 = vld [vmem:[#allocation10 + $0x28] sm:$0xf0]  ;;  %v2521_v10 = vor.u32 %v2776_v54, %v2520_v61  ;;  %v2772_v34 = vld [vmem:[#allocation10 + $0x84] sm:$0xf0] }
 0x205   : > { %v991_v26 = vrot.slane %v3387_v18, 7  ;;  %v993_v43 = vrot.slane %v3389_v19, 7  ;;  %v907_v44 = vpop.f32.mrf.mxu2  ;;  %v926_v58 = vpop.f32.mrf.mxu3  ;;  %v3408_v46 = vrot.slane %v1108_v14, 1  ;;  %1567 = vmatpush.bf16.msrb.mxu1 %v2537_v33  ;;  %v2461_v11 = vor.u32 %v2759_v8, %v2458_v9  ;;  %v2448_v14 = vld [vmem:[#allocation10 + $0x10] sm:$0xf] }
 0x206   : > { %v935_v28 = vadd.f32 %v907_v44, %v767_v12  ;;  %v936_v30 = vadd.f32 %v926_v58, %v786_v13  ;;  %v2775_v12 = vld [vmem:[#allocation10 + $0xa4] sm:$0xf]  ;;  %v2522_v13 = vld [vmem:[#allocation10 + $0xa8] sm:$0xf0]  ;;  %v2512_v44 = vld [vmem:[#allocation10 + $0x90] sm:$0xf] }
 0x207   : > { %v992_v37 = vsel %vm984_vm9, %v987_v40, %v991_v26  ;;  %v994_v38 = vsel %vm984_vm9, %v989_v24, %v993_v43  ;;  %v2762_v40 = vld [vmem:[#allocation10 + $0x34] sm:$0xf0]  ;;  %v2528_v24 = vld [vmem:[#allocation10 + $0xb0] sm:$0xf]  ;;  %1606 = vmatpush.bf16.msrb.mxu3 %v2533_v53  ;;  %v2525_v22 = vor.u32 %v2775_v12, %v2522_v13  ;;  %v1122_v59 = vrot.slane %v1120_v42, 1 }
 0x208   : > { %v949_v41 = vadd.f32 %v3323_v6, %v935_v28  ;;  %v950_v20 = vadd.f32 %v3325_v7, %v936_v30  ;;  %v2465_v48 = vor.u32 %v2762_v40, %v2464_v45  ;;  %v2761_v7 = vld [vmem:[#allocation10 + $0x34] sm:$0xf]  ;;  %v2529_v56 = vor.u32 %v2778_v49, %v2528_v24  ;;  %v2774_v18 = vld [vmem:[#allocation10 + $0x94] sm:$0xf0]  ;;  %v2755_v49 = vld [vmem:[#allocation10 + $0x4] sm:$0xf] }
 0x209   : > { %v2469_v57 = vor.u32 %v2761_v7, %v2466_v51  ;;  %v2449_v28 = vor.u32 %v2758_v23, %v2448_v14  ;;  %v1622_v30 = vld [vmem:[#allocation3 + $0x8] sm:$0xfc]  ;;  %v2513_v32 = vor.u32 %v2774_v18, %v2512_v44  ;;  %v1111_v42 = vor.u32 %v3408_v46, %v1106_v39  ;;  %v2506_v7 = vld [vmem:[#allocation10 + $0x88] sm:$0xf0]  ;;  %v2688_v53 = vld [vmem:[#allocation10 + $0x2f0] sm:$0xf] }
 0x20a   : > { %vm957_vm14 = vcmp.gt.f32.partialorder %v949_v41, 0.0  ;;  %v966_v50 = vmul.f32 %v3330_v29, %v949_v41  ;;  %vm958_vm15 = vcmp.gt.f32.partialorder %v950_v20, 0.0  ;;  %v967_v6 = vmul.f32 %v3330_v29, %v950_v20  ;;  %1549 = vmatpush.bf16.msrb.mxu0 %v2465_v48  ;;  %1568 = vmatpush.bf16.msrb.mxu1 %v2529_v56  ;;  %v2849_v12 = vld [vmem:[#allocation10 + $0x2f4] sm:$0xf] }
 0x20b   : > { %1587 = vmatpush.bf16.msrb.mxu2 %v2469_v57  ;;  %1607 = vmatpush.bf16.msrb.mxu3 %v2525_v22  ;;  %v1123_v45 = vor.u32 %v1122_v59, %v1118_v25  ;;  %v2517_v24 = vor.u32 %v2773_v35, %v2514_v36  ;;  %v2505_v25 = vor.u32 %v2772_v34, %v2504_v47  ;;  %v2832_v59 = vld [vmem:[#allocation10 + $0x264] sm:$0xf0]  ;;  %v2847_v36 = vld [vmem:[#allocation10 + $0x2e4] sm:$0xf]  ;;  %v2846_v47 = vld [vmem:[#allocation10 + $0x2d4] sm:$0xf0] }
 0x20c   : > { %v974_v2 = vsel %vm957_vm14, %v949_v41, %v966_v50  ;;  %v975_v3 = vsel %vm958_vm15, %v950_v20, %v967_v6  ;;  %v1625_v41 = vpack.c.bf16 %v3365_v52, %v1621_v16  ;;  %v1626_v20 = vpack.c.bf16 %v3372_v55, %v1622_v30  ;;  %v2442_v50 = vld [vmem:[#allocation10 + $0x8] sm:$0xf0]  ;;  %v2771_v6 = vld [vmem:[#allocation10 + $0x84] sm:$0xf]  ;;  %v2690_v16 = vld [vmem:[#allocation10 + $0x2f8] sm:$0xf0] }
 0x20d   : > { %v995_v60 = vrot.slane %v974_v2, 7  ;;  %v997_v29 = vrot.slane %v975_v3, 7  ;;  %v2445_v0 = vor.u32 %v2755_v49, %v2442_v50  ;;  %v2509_v1 = vor.u32 %v2771_v6, %v2506_v7  ;;  %v2624_v2 = vld [vmem:[#allocation10 + $0x270] sm:$0xf]  ;;  %v2834_v3 = vld [vmem:[#allocation10 + $0x274] sm:$0xf0] }
 0x20e   : > { %1550 = vmatpush.bf16.msrb.mxu0 %v2457_v5  ;;  %1569 = vmatpush.bf16.msrb.mxu1 %v2521_v10  ;;  %v1669_v56 = vrot.slane %v1625_v41, 1  ;;  %v1672_v62 = vrot.slane %v1626_v20, 1  ;;  %v2625_v54 = vor.u32 %v2834_v3, %v2624_v2  ;;  %v2833_v10 = vld [vmem:[#allocation10 + $0x274] sm:$0xf]  ;;  %v2693_v44 = vor.u32 %v2849_v12, %v2690_v16  ;;  %v2848_v30 = vld [vmem:[#allocation10 + $0x2e4] sm:$0xf0] }
 0x20f   : > { %v996_v17 = vsel %vm984_vm9, %v991_v26, %v995_v60  ;;  %1017 = vst [vmem:[#allocation3 + $0x40] sm:$0x1] %v995_v60  ;;  %v998_v21 = vsel %vm984_vm9, %v993_v43, %v997_v29  ;;  %v2757_v26 = vld [vmem:[#allocation10 + $0x14] sm:$0xf]  ;;  %1588 = vmatpush.bf16.msrb.mxu2 %v2461_v11  ;;  %1608 = vmatpush.bf16.msrb.mxu3 %v2517_v24  ;;  %v2850_v60 = vld [vmem:[#allocation10 + $0x2f4] sm:$0xf0] }
 0x210   : > { %v3418_v58 = vpack.c.bf16 %v996_v17, %v992_v37  ;;  %v3420_v27 = vpack.c.bf16 %v998_v21, %v994_v38  ;;  %1018 = vst [vmem:[#allocation3 + $0x48] sm:$0x1] %v997_v29  ;;  %v2440_v37 = vld [vmem:[#allocation10] sm:$0xf]  ;;  %v2756_v38 = vld [vmem:[#allocation10 + $0x4] sm:$0xf0]  ;;  %v2453_v48 = vor.u32 %v2757_v26, %v2450_v31  ;;  %v2689_v9 = vor.u32 %v2850_v60, %v2688_v53 }
 0x211   : > { %v2441_v15 = vor.u32 %v2756_v38, %v2440_v37  ;;  %v2626_v11 = vld [vmem:[#allocation10 + $0x278] sm:$0xf0]  ;;  %v2616_v17 = vld [vmem:[#allocation10 + $0x260] sm:$0xf]  ;;  %v2831_v26 = vld [vmem:[#allocation10 + $0x264] sm:$0xf] }
 0x212   : > { %v1113_v19 = vshll.u32 %v3418_v58, 16  ;;  %v1125_v43 = vshll.u32 %v3420_v27, 16  ;;  %1551 = vmatpush.bf16.msrb.mxu0 %v2449_v28  ;;  %1570 = vmatpush.bf16.msrb.mxu1 %v2513_v32  ;;  %v1670_v57 = vrot.slane %v3418_v58, 1  ;;  %v1673_v5 = vrot.slane %v3420_v27, 1  ;;  %v2680_v28 = vld [vmem:[#allocation10 + $0x2e0] sm:$0xf] }
 0x213   : > { %1589 = vmatpush.bf16.msrb.mxu2 %v2453_v48  ;;  %v1129_v13 = vshrl.u32 %v3418_v58, 16  ;;  %v3449_v14 = vor.u32 %v2833_v10, %v2626_v11  ;;  %v1137_v22 = vshrl.u32 %v3420_v27, 16  ;;  %1609 = vmatpush.bf16.msrb.mxu3 %v2509_v1  ;;  %v2617_v18 = vor.u32 %v2832_v59, %v2616_v17  ;;  %v2618_v31 = vld [vmem:[#allocation10 + $0x268] sm:$0xf0]  ;;  %v2608_v41 = vld [vmem:[#allocation10 + $0x250] sm:$0xf] }
 0x214   : > { %v3429_v33 = vrot.slane %v1113_v19, 1  ;;  %v3433_v40 = vrot.slane %v1125_v43, 1  ;;  %v3445_v29 = vsel %vm1668_vm1, %v1669_v56, %v1670_v57  ;;  %v3454_v21 = vsel %vm1668_vm1, %v1672_v62, %v1673_v5  ;;  %v2682_v37 = vld [vmem:[#allocation10 + $0x2e8] sm:$0xf0]  ;;  %v2830_v20 = vld [vmem:[#allocation10 + $0x254] sm:$0xf0] }
 0x215   : > { %v2681_v32 = vor.u32 %v2848_v30, %v2680_v28  ;;  %v3459_v35 = vor.u32 %v2831_v26, %v2618_v31  ;;  %v2685_v38 = vor.u32 %v2847_v36, %v2682_v37  ;;  %v2829_v34 = vld [vmem:[#allocation10 + $0x254] sm:$0xf]  ;;  %v2610_v48 = vld [vmem:[#allocation10 + $0x258] sm:$0xf0]  ;;  %v2600_v6 = vld [vmem:[#allocation10 + $0x240] sm:$0xf] }
 0x216   : > { %v1116_v63 = vsel %vm1104_vm0, %v1111_v42, %v3429_v33  ;;  %v1128_v39 = vsel %vm1104_vm0, %v1123_v45, %v3433_v40  ;;  %v1065_v46 = vld [vmem:[#allocation3 + $0x40] sm:$0x1]  ;;  %1552 = vmatpush.bf16.msrb.mxu0 %v2441_v15  ;;  %1571 = vmatpush.bf16.msrb.mxu1 %v2505_v25  ;;  %v2609_v45 = vor.u32 %v2830_v20, %v2608_v41  ;;  %v2845_v49 = vld [vmem:[#allocation10 + $0x2d4] sm:$0xf]  ;;  %v2674_v50 = vld [vmem:[#allocation10 + $0x2d8] sm:$0xf0] }
 0x217   : > { %1317 = vmatmul.bf16.vlgmr.msra.gmra.mxu0 %v1116_v63  ;;  %1336 = vmatmul.bf16.vlgmr.msra.gmra.mxu1 %v1128_v39  ;;  %v1069_v51 = vpack.c.bf16 %v1065_v46, %v1065_v46  ;;  %v1066_v61 = vld [vmem:[#allocation3 + $0x48] sm:$0x1]  ;;  %v2672_v42 = vld [vmem:[#allocation10 + $0x2d0] sm:$0xf]  ;;  %v2828_v46 = vld [vmem:[#allocation10 + $0x244] sm:$0xf0]  ;;  %v1131_v7 = vor.u32 %v1129_v13, %v3429_v33 }
 0x218   : > { %1355 = vmatmul.bf16.vlgmr.msra.gmra.mxu2 %v1116_v63  ;;  %1374 = vmatmul.bf16.vlgmr.msra.gmra.mxu3 %v1128_v39  ;;  %v1070_v8 = vpack.c.bf16 %v1066_v61, %v1066_v61  ;;  %v2673_v24 = vor.u32 %v2846_v47, %v2672_v42  ;;  %v3462_v63 = vor.u32 %v2829_v34, %v2610_v48  ;;  %v2664_v15 = vld [vmem:[#allocation10 + $0x2c0] sm:$0xf]  ;;  %v2844_v25 = vld [vmem:[#allocation10 + $0x2c4] sm:$0xf0]  ;;  %v2602_v56 = vld [vmem:[#allocation10 + $0x248] sm:$0xf0] }
 0x219   : > { %v3440_v4 = vshll.u32 %v1069_v51, 16  ;;  %1590 = vmatpush.bf16.msrb.mxu2 %v2445_v0  ;;  %1900 = vmatpush.bf16.msra.mxu3 %v2693_v44  ;;  %v2677_v39 = vor.u32 %v2845_v49, %v2674_v50  ;;  %v2827_v51 = vld [vmem:[#allocation10 + $0x244] sm:$0xf]  ;;  %v1139_v0 = vor.u32 %v1137_v22, %v3433_v40  ;;  %v2666_v1 = vld [vmem:[#allocation10 + $0x2c8] sm:$0xf0]  ;;  %v2601_v3 = vor.u32 %v2828_v46, %v2600_v6  ;;  %v1019_v48 = vld [vmem:[#allocation3] sm:$0xff] }
 0x21a   : > { %1843 = vmatpush.bf16.msra.mxu0 %v2625_v54  ;;  %v1141_v23 = vshll.u32 %v1070_v8, 16  ;;  %1862 = vmatpush.bf16.msra.mxu1 %v2689_v9  ;;  %v2843_v62 = vld [vmem:[#allocation10 + $0x2c4] sm:$0xf]  ;;  %v2665_v53 = vor.u32 %v2844_v25, %v2664_v15  ;;  %v3469_v61 = vor.u32 %v2827_v51, %v2602_v56  ;;  %v2592_v54 = vld [vmem:[#allocation10 + $0x230] sm:$0xf] }
 0x21b   : > { %v1135_v19 = vrot.slane %v3440_v4, 1  ;;  %v2669_v33 = vor.u32 %v2843_v62, %v2666_v1  ;;  %v2826_v40 = vld [vmem:[#allocation10 + $0x234] sm:$0xf0]  ;;  %v2656_v60 = vld [vmem:[#allocation10 + $0x2b0] sm:$0xf]  ;;  %v1027_v1 = vpack.c.bf16 %v3365_v52, %v1019_v48 }
 0x21c   : > { %v1143_v43 = vrot.slane %v1141_v23, 1  ;;  %v2593_v8 = vor.u32 %v2826_v40, %v2592_v54  ;;  %v2842_v9 = vld [vmem:[#allocation10 + $0x2b4] sm:$0xf0]  ;;  %v2825_v10 = vld [vmem:[#allocation10 + $0x234] sm:$0xf] }
 0x21d   : > { %2852 = vmatpush.bf16.msra.mxu2 %v3449_v14  ;;  %1901 = vmatpush.bf16.msra.mxu3 %v2685_v38  ;;  %v1136_v2 = vsel %vm1104_vm0, %v1131_v7, %v1135_v19  ;;  %v2594_v11 = vld [vmem:[#allocation10 + $0x238] sm:$0xf0]  ;;  %v2657_v12 = vor.u32 %v2842_v9, %v2656_v60  ;;  %v2841_v16 = vld [vmem:[#allocation10 + $0x2b4] sm:$0xf]  ;;  %v2584_v22 = vld [vmem:[#allocation10 + $0x220] sm:$0xf] }
 0x21e   : > { %1844 = vmatpush.bf16.msra.mxu0 %v2617_v18  ;;  %1863 = vmatpush.bf16.msra.mxu1 %v2681_v32  ;;  %v1144_v4 = vsel %vm1104_vm0, %v1139_v0, %v1143_v43  ;;  %v3472_v13 = vor.u32 %v2825_v10, %v2594_v11  ;;  %v2658_v17 = vld [vmem:[#allocation10 + $0x2b8] sm:$0xf0]  ;;  %v2824_v44 = vld [vmem:[#allocation10 + $0x224] sm:$0xf0]  ;;  %v2648_v59 = vld [vmem:[#allocation10 + $0x2a0] sm:$0xf] }
 0x21f   : > { %v2661_v23 = vor.u32 %v2841_v16, %v2658_v17  ;;  %v2840_v28 = vld [vmem:[#allocation10 + $0x2a4] sm:$0xf0]  ;;  %v2823_v18 = vld [vmem:[#allocation10 + $0x224] sm:$0xf]  ;;  %v2586_v30 = vld [vmem:[#allocation10 + $0x228] sm:$0xf0]  ;;  %v2585_v31 = vor.u32 %v2824_v44, %v2584_v22 }
 0x220   : > { %v2839_v26 = vld [vmem:[#allocation10 + $0x2a4] sm:$0xf]  ;;  %v2649_v19 = vor.u32 %v2840_v28, %v2648_v59  ;;  %v2650_v43 = vld [vmem:[#allocation10 + $0x2a8] sm:$0xf0]  ;;  %v2576_v32 = vld [vmem:[#allocation10 + $0x210] sm:$0xf]  ;;  %v2589_v37 = vor.u32 %v2823_v18, %v2586_v30 }
 0x221   : > { %2853 = vmatpush.bf16.msra.mxu2 %v3459_v35  ;;  %1902 = vmatpush.bf16.msra.mxu3 %v2677_v39  ;;  %v2822_v36 = vld [vmem:[#allocation10 + $0x214] sm:$0xf0]  ;;  %v2653_v38 = vor.u32 %v2839_v26, %v2650_v43  ;;  %v2640_v41 = vld [vmem:[#allocation10 + $0x290] sm:$0xf]  ;;  %v2821_v42 = vld [vmem:[#allocation10 + $0x214] sm:$0xf] }
 0x222   : > { %1845 = vmatpush.bf16.msra.mxu0 %v2609_v45  ;;  %1864 = vmatpush.bf16.msra.mxu1 %v2673_v24  ;;  %v2838_v20 = vld [vmem:[#allocation10 + $0x294] sm:$0xf0]  ;;  %v2578_v45 = vld [vmem:[#allocation10 + $0x218] sm:$0xf0]  ;;  %v2837_v47 = vld [vmem:[#allocation10 + $0x294] sm:$0xf]  ;;  %v2577_v49 = vor.u32 %v2822_v36, %v2576_v32 }
 0x223   : > { %v2642_v34 = vld [vmem:[#allocation10 + $0x298] sm:$0xf0]  ;;  %v2641_v50 = vor.u32 %v2838_v20, %v2640_v41  ;;  %v2568_v6 = vld [vmem:[#allocation10 + $0x200] sm:$0xf]  ;;  %v2820_v39 = vld [vmem:[#allocation10 + $0x204] sm:$0xf0]  ;;  %v2581_v46 = vor.u32 %v2821_v42, %v2578_v45 }
 0x224   : > { %v1020_v24 = vld [vmem:[#allocation3 + $0x8] sm:$0xff]  ;;  %v2645_v15 = vor.u32 %v2837_v47, %v2642_v34  ;;  %v2632_v25 = vld [vmem:[#allocation10 + $0x280] sm:$0xf]  ;;  %v2836_v7 = vld [vmem:[#allocation10 + $0x284] sm:$0xf0] }
 0x225   : > { %2854 = vmatpush.bf16.msra.mxu2 %v3462_v63  ;;  %1903 = vmatpush.bf16.msra.mxu3 %v2669_v33  ;;  %v2819_v51 = vld [vmem:[#allocation10 + $0x204] sm:$0xf]  ;;  %v2570_v56 = vld [vmem:[#allocation10 + $0x208] sm:$0xf0]  ;;  %v1623_v52 = vld [vmem:[#allocation3 + $0x40] sm:$0x3] }
 0x226   : > { %1846 = vmatpush.bf16.msra.mxu0 %v2601_v3  ;;  %1865 = vmatpush.bf16.msra.mxu1 %v2665_v53  ;;  %v2835_v62 = vld [vmem:[#allocation10 + $0x284] sm:$0xf]  ;;  %v2634_v0 = vld [vmem:[#allocation10 + $0x288] sm:$0xf0]  ;;  %v2569_v3 = vor.u32 %v2820_v39, %v2568_v6  ;;  %v2633_v53 = vor.u32 %v2836_v7, %v2632_v25  ;;  %v1927_v45 = vld [vmem:[%s3573_s6] sm:$0x3] }
 0x227   : > { %1322 = vmatmul.bf16.gmra.mxu0 %v1136_v2  ;;  %1341 = vmatmul.bf16.gmra.mxu1 %v1144_v4  ;;  %v2637_v33 = vor.u32 %v2835_v62, %v2634_v0  ;;  %v1929_v6 = vperm.slane %v1927_v45, 0 }
 0x228   : > { %1360 = vmatmul.bf16.gmra.mxu2 %v1136_v2  ;;  %1379 = vmatmul.bf16.gmra.mxu3 %v1144_v4  ;;  %v1028_v2 = vpack.c.bf16 %v3372_v55, %v1020_v24  ;;  %v2573_v4 = vor.u32 %v2819_v51, %v2570_v56  ;;  %v1627_v55 = vpack.c.bf16 %v1623_v52, %v1623_v52 }
 0x229   : > { %2855 = vmatpush.bf16.msra.mxu2 %v3469_v61  ;;  %1904 = vmatpush.bf16.msra.mxu3 %v2661_v23 }
 0x22a   : > { %1847 = vmatpush.bf16.msra.mxu0 %v2593_v8  ;;  %1866 = vmatpush.bf16.msra.mxu1 %v2657_v12 }
 0x22d   : > { %2856 = vmatpush.bf16.msra.mxu2 %v3472_v13  ;;  %1905 = vmatpush.bf16.msra.mxu3 %v2653_v38 }
 0x22e   : > { %1848 = vmatpush.bf16.msra.mxu0 %v2585_v31  ;;  %1867 = vmatpush.bf16.msra.mxu1 %v2649_v19 }
 0x231   : > { %2857 = vmatpush.bf16.msra.mxu2 %v2589_v37  ;;  %1906 = vmatpush.bf16.msra.mxu3 %v2645_v15 }
 0x232   : > { %1849 = vmatpush.bf16.msra.mxu0 %v2577_v49  ;;  %1868 = vmatpush.bf16.msra.mxu1 %v2641_v50 }
 0x235   : > { %2858 = vmatpush.bf16.msra.mxu2 %v2581_v46  ;;  %1907 = vmatpush.bf16.msra.mxu3 %v2637_v33 }
 0x236   : > { %1850 = vmatpush.bf16.msra.mxu0 %v2569_v3  ;;  %1869 = vmatpush.bf16.msra.mxu1 %v2633_v53 }
 0x237   : > { %1553 = vmatmul.bf16.vlgmr.msrb.gmra.mxu0 %v1027_v1  ;;  %1572 = vmatmul.bf16.vlgmr.msrb.gmra.mxu1 %v1028_v2 }
 0x238   : > { %1591 = vmatmul.bf16.vlgmr.msrb.gmra.mxu2 %v1027_v1  ;;  %1610 = vmatmul.bf16.vlgmr.msrb.gmra.mxu3 %v1028_v2 }
 0x239   : > { %2859 = vmatpush.bf16.msra.mxu2 %v2573_v4 }
 0x23a   : > { %1881 = vmatpush.bf16.msrb.mxu0 %v3449_v14  ;;  %v1675_v14 = vrot.slane %v1627_v55, 1 }
 0x23e   : > { %1882 = vmatpush.bf16.msrb.mxu0 %v3459_v35  ;;  %v1676_v35 = vsel %vm1668_vm1, %v1670_v57, %v1675_v14 }
 0x242   : > { %1883 = vmatpush.bf16.msrb.mxu0 %v3462_v63  ;;  %v1624_v63 = vld [vmem:[#allocation3 + $0x48] sm:$0x3] }
 0x246   : > { %1884 = vmatpush.bf16.msrb.mxu0 %v3469_v61  ;;  %v1628_v61 = vpack.c.bf16 %v1624_v63, %v1624_v63 }
 0x247   : > { %1558 = vmatmul.bf16.gmra.mxu0 %v3418_v58  ;;  %1577 = vmatmul.bf16.gmra.mxu1 %v3420_v27 }
 0x248   : > { %1596 = vmatmul.bf16.gmra.mxu2 %v3418_v58  ;;  %1615 = vmatmul.bf16.gmra.mxu3 %v3420_v27  ;;  %v1677_v54 = vrot.slane %v1628_v61, 1 }
 0x24a   : > { %1885 = vmatpush.bf16.msrb.mxu0 %v3472_v13  ;;  %v1678_v40 = vsel %vm1668_vm1, %v1673_v5, %v1677_v54 }
 0x24e   : > { %1886 = vmatpush.bf16.msrb.mxu0 %v2589_v37 }
 0x252   : > { %1887 = vmatpush.bf16.msrb.mxu0 %v2581_v46 }
 0x256   : > { %1888 = vmatpush.bf16.msrb.mxu0 %v2573_v4 }
 0x257   : > { %1851 = vmatmul.bf16.vlgmr.msra.gmra.mxu0 %v3445_v29  ;;  %1870 = vmatmul.bf16.vlgmr.msra.gmra.mxu1 %v3454_v21 }
 0x258   : > { %1894 = vmatmul.bf16.vlgmr.msra.gmra.mxu2 %v1676_v35  ;;  %1908 = vmatmul.bf16.vlgmr.msra.gmra.mxu3 %v3454_v21 }
 0x267   : > { %1856 = vmatmul.bf16.gmra.mxu0 %v1676_v35  ;;  %1875 = vmatmul.bf16.gmra.mxu1 %v1678_v40 }
 0x268   : > { %1913 = vmatmul.bf16.gmra.mxu3 %v1678_v40 }
 0x277   : > { %1889 = vmatmul.bf16.vlgmr.msrb.gmra.mxu0 %v3445_v29 }
 0x294   : > { %v1318_v60 = vpop.f32.mrf.mxu0  ;;  %v1337_v58 = vpop.f32.mrf.mxu1 }
 0x295   : > { %v1338_v20 = vadd.f32 %v1337_v58, %v1318_v60 }
 0x29b   : > { %v1356_v8 = vpop.f32.mrf.mxu2  ;;  %v1375_v57 = vpop.f32.mrf.mxu3 }
 0x29c   : > { %v3496_v9 = vadd.f32 %v1375_v57, %v1356_v8  ;;  %v1320_v21 = vpop.f32.mrf.mxu0  ;;  %v1339_v10 = vpop.f32.mrf.mxu1 }
 0x29d   : > { %v1340_v39 = vadd.f32 %v1339_v10, %v1320_v21 }
 0x2a3   : > { %v1358_v11 = vpop.f32.mrf.mxu2  ;;  %v1377_v12 = vpop.f32.mrf.mxu3 }
 0x2a4   : > { %v3498_v13 = vadd.f32 %v1377_v12, %v1358_v11  ;;  %v1323_v27 = vpop.f32.mrf.mxu0  ;;  %v1342_v16 = vpop.f32.mrf.mxu1  ;;  %v1930_v11 = vperm.slane %v1927_v45, 1 }
 0x2a5   : > { %v1343_v1 = vadd.f32 %v1342_v16, %v1323_v27 }
 0x2ab   : > { %v1380_v5 = vpop.f32.mrf.mxu3  ;;  %v1361_v23 = vpop.f32.mrf.mxu2 }
 0x2ac   : > { %v1325_v17 = vpop.f32.mrf.mxu0  ;;  %v1344_v22 = vpop.f32.mrf.mxu1  ;;  %v1381_v63 = vadd.f32 %v1380_v5, %v1361_v23 }
 0x2ad   : > { %v1345_v61 = vadd.f32 %v1344_v22, %v1325_v17 }
 0x2b3   : > { %v3500_v44 = vpop.f32.mrf.mxu3  ;;  %v1363_v28 = vpop.f32.mrf.mxu2 }
 0x2b4   : > { %v1554_v29 = vpop.f32.mrf.mxu0  ;;  %v1573_v59 = vpop.f32.mrf.mxu1 }
 0x2b5   : > { %v1555_v42 = vadd.f32 %v1554_v29, %v1338_v20 }
 0x2b7   : > { %v1574_v24 = vadd.f32 %v1573_v59, %v1555_v42  ;;  %v1383_v59 = vadd.f32 %v3500_v44, %v1363_v28 }
 0x2bb   : > { %v3502_v18 = vpop.f32.mrf.mxu3  ;;  %v3504_v31 = vpop.f32.mrf.mxu2 }
 0x2bc   : > { %v1556_v30 = vpop.f32.mrf.mxu0  ;;  %v1575_v26 = vpop.f32.mrf.mxu1 }
 0x2bd   : > { %v1557_v15 = vadd.f32 %v1556_v30, %v1340_v39  ;;  %v1593_v30 = vadd.f32 %v3504_v31, %v3496_v9 }
 0x2bf   : > { %v1576_v62 = vadd.f32 %v1575_v26, %v1557_v15  ;;  %v1612_v44 = vadd.f32 %v3502_v18, %v1593_v30 }
 0x2c3   : > { %v3506_v19 = vpop.f32.mrf.mxu3  ;;  %v3508_v36 = vpop.f32.mrf.mxu2 }
 0x2c4   : > { %v1559_v43 = vpop.f32.mrf.mxu0  ;;  %v1578_v32 = vpop.f32.mrf.mxu1  ;;  %v1595_v9 = vadd.f32 %v3508_v36, %v3498_v13 }
 0x2c5   : > { %v1560_v53 = vadd.f32 %v1559_v43, %v1343_v1 }
 0x2c6   : > { %v1614_v18 = vadd.f32 %v3506_v19, %v1595_v9 }
 0x2c7   : > { %v1579_v14 = vadd.f32 %v1578_v32, %v1560_v53 }
 0x2cb   : > { %v1616_v37 = vpop.f32.mrf.mxu3  ;;  %v1597_v49 = vpop.f32.mrf.mxu2 }
 0x2cc   : > { %v1561_v38 = vpop.f32.mrf.mxu0  ;;  %v1580_v41 = vpop.f32.mrf.mxu1  ;;  %v1598_v40 = vadd.f32 %v1597_v49, %v1381_v63 }
 0x2cd   : > { %v1562_v60 = vadd.f32 %v1561_v38, %v1345_v61 }
 0x2ce   : > { %v1617_v21 = vadd.f32 %v1616_v37, %v1598_v40 }
 0x2cf   : > { %v1581_v16 = vadd.f32 %v1580_v41, %v1562_v60 }
 0x2d3   : > { %v1618_v47 = vpop.f32.mrf.mxu3  ;;  %v1599_v2 = vpop.f32.mrf.mxu2 }
 0x2d4   : > { %v1852_v34 = vpop.f32.mrf.mxu0  ;;  %v1871_v48 = vpop.f32.mrf.mxu1  ;;  %v1600_v22 = vadd.f32 %v1599_v2, %v1383_v59 }
 0x2d5   : > { %v1872_v50 = vadd.f32 %v1871_v48, %v1852_v34 }
 0x2d6   : > { %v1619_v37 = vadd.f32 %v1618_v47, %v1600_v22 }
 0x2d7   : > { %v1919_v46 = vadd.f32 %v1872_v50, %v1574_v24 }
 0x2d9   : > { %v1933_v25 = vadd.f32 %v1929_v6, %v1919_v46 }
 0x2db   : > { %1941 = vst [vmem:[%s3516_s22] sm:$0xff] %v1933_v25  ;;  %v1909_v7 = vpop.f32.mrf.mxu3  ;;  %v1895_v58 = vpop.f32.mrf.mxu2 }
 0x2dc   : > { %v1854_v51 = vpop.f32.mrf.mxu0  ;;  %v1873_v56 = vpop.f32.mrf.mxu1 }
 0x2dd   : > { %v1874_v0 = vadd.f32 %v1873_v56, %v1854_v51 }
 0x2df   : > { %v1921_v3 = vadd.f32 %v1874_v0, %v1576_v62 }
 0x2e1   : > { %v1935_v4 = vadd.f32 %v1929_v6, %v1921_v3 }
 0x2e3   : > { %1943 = vst [vmem:[%s3516_s22 + $0x10] sm:$0xff] %v1935_v4  ;;  %v1911_v33 = vpop.f32.mrf.mxu3  ;;  %v1897_v43 = vpop.f32.mrf.mxu2 }
 0x2e4   : > { %v1857_v52 = vpop.f32.mrf.mxu0  ;;  %v1876_v55 = vpop.f32.mrf.mxu1 }
 0x2e5   : > { %v1877_v35 = vadd.f32 %v1876_v55, %v1857_v52 }
 0x2e7   : > { %v1923_v54 = vadd.f32 %v1877_v35, %v1579_v14 }
 0x2e9   : > { %v1937_v8 = vadd.f32 %v1929_v6, %v1923_v54 }
 0x2eb   : > { %1945 = vst [vmem:[%s3516_s22 + $0x20] sm:$0xff] %v1937_v8  ;;  %v1914_v57 = vpop.f32.mrf.mxu3 }
 0x2ec   : > { %v1915_v10 = vadd.f32 %v1914_v57, %v1895_v58  ;;  %v1859_v12 = vpop.f32.mrf.mxu0  ;;  %v1878_v27 = vpop.f32.mrf.mxu1 }
 0x2ed   : > { %v1879_v29 = vadd.f32 %v1878_v27, %v1859_v12 }
 0x2ee   : > { %v1924_v5 = vadd.f32 %v1915_v10, %v1617_v21 }
 0x2ef   : > { %v1925_v17 = vadd.f32 %v1879_v29, %v1581_v16 }
 0x2f0   : > { %v1938_v23 = vadd.f32 %v1930_v11, %v1924_v5 }
 0x2f1   : > { %v1939_v26 = vadd.f32 %v1929_v6, %v1925_v17 }
 0x2f2   : > { %1946 = vst [vmem:[%s3516_s22 + $0x28] sm:$0xff] %v1938_v23 }
 0x2f3   : > { %1947 = vst [vmem:[%s3516_s22 + $0x30] sm:$0xff] %v1939_v26  ;;  %v1916_v32 = vpop.f32.mrf.mxu3 }
 0x2f4   : > { %v1917_v38 = vadd.f32 %v1916_v32, %v1897_v43  ;;  %v1890_v41 = vpop.f32.mrf.mxu0 }
 0x2f5   : > { %v1910_v28 = vadd.f32 %v1909_v7, %v1890_v41 }
 0x2f6   : > { %v1926_v20 = vadd.f32 %v1917_v38, %v1619_v37 }
 0x2f7   : > { %v1920_v42 = vadd.f32 %v1910_v28, %v1612_v44 }
 0x2f8   : > { %v1940_v45 = vadd.f32 %v1930_v11, %v1926_v20 }
 0x2f9   : > { %v1934_v31 = vadd.f32 %v1930_v11, %v1920_v42 }
 0x2fa   : > { %1948 = vst [vmem:[%s3516_s22 + $0x38] sm:$0xff] %v1940_v45 }
 0x2fb   : > { %1942 = vst [vmem:[%s3516_s22 + $0x8] sm:$0xff] %v1934_v31 }
 0x2fc   : > { %v1892_v47 = vpop.f32.mrf.mxu0 }
 0x2fd   : > { %v1912_v34 = vadd.f32 %v1911_v33, %v1892_v47 }
 0x2ff   : > { %v1922_v48 = vadd.f32 %v1912_v34, %v1614_v18 }
 0x301   : > { %v1936_v24 = vadd.f32 %v1930_v11, %v1922_v48 }
 0x303   : > { %1944 = vst [vmem:[%s3516_s22 + $0x18] sm:$0xff] %v1936_v24 }
 0x304   : > { %3079 = shalt.err (!%p3076_p8)
}
 0x305   : > { %s3137_s21 = smov 256   ;;  %s3138_s24 = smov 16  }
 0x306   : > { %2876 = dma.vmem_to_hbm [thread:$0]  (%p3222_p5), %s1963_s14, 1024, %s1965_s17, %s1950_s9, %s3137_s21, %s3137_s21, %s3138_s24  }
 0x307 PF: > { %p2903_p9 = scmp.ge.s32.totalorder %s3126_s30, 2  ;;  %s1979_s25 = sand.u32 1, %s3114_s27  }
 0x308   : > { %s1980_s20 = scalar_lea.sflag [#allocation6], %s1979_s25 }
 0x309   : > { %p2892_p10 = pnand %p2903_p9, %p3226_p6 }
 0x30b   : > { %p2893_p11 = pneg %p2892_p10 }
 0x30d   : > { %3109 = dma.done.wait (%p2893_p11), %s1980_s20, 1024  }
 0x30e   : > { %3111 = vsyncadd (%p2893_p11), %s1980_s20, 4294966272  ;;  %s3592_s30 = sld [smem:[#allocation18_spill]]  ;;  %s3595_s27 = smov %s3118_s28 }
 0x30f   : > { %s3593_s22 = sld [smem:[#allocation17_spill]] }
 0x310   : > { %s3594_s29 = sld [smem:[#allocation19_spill]] }
 0x314   : > { %p21_p12 = scmp.ge.s32.totalorder %s3592_s30, 4  }
 0x315   : > { %s3596_s28 = smov %s3593_s22 }
 0x316   :  { %23 = sbr.rel (!%p21_p12) target bundleno = 9 (0x9), region = 110 }
 0x31b   :  { %1986 = vsyncpa [#allocation5], 1 }
 0x31c   :  { %1988 = vsyncpa [#allocation5 + $0x1], 1 }
 0x31d   :  { %1989 = vsyncpa [#allocation9], 1 }
 0x31e   :  { %1990 = vsyncpa [#allocation6], 1 }
 0x31f   :  { %1992 = vsyncpa [#allocation6 + $0x1], 1 }
 0x320   :  { %1993 = vsyncpa [#allocation7], 1 }
 0x321   :  { %1995 = vsyncpa [#allocation7 + $0x1], 1 }

</bundles_post_ra>
